<compile_context>
chip_gen: v7x
topology: tpu7x:2x2x1
jax: 0.10.0
libtpu: 0.0.40
codegen_flags: <defaults>
</compile_context>

<pallas_src>
import functools

import jax
import jax.numpy as jnp
from jax.experimental import pallas as pl
from jax.experimental.pallas import tpu as pltpu


def _pad_gate_columns(w, H, Hp):
    """(rows, 4H) -> (rows, 4*Hp): gate g's H real columns land at lanes
    [g*Hp, g*Hp + H); all other lanes are zero."""
    rows = w.shape[0]
    out = jnp.zeros((rows, 4 * Hp), dtype=jnp.float32)
    for g in range(4):
        out = out.at[:, g * Hp:g * Hp + H].set(w[:, g * H:(g + 1) * H])
    return out


def _lstm_seq_kernel(x_ref, wih_ref, whh_ref, b_ref, h0_ref, c0_ref, out_ref,
                     *, seq_len, batch, hp):
    """Whole LSTM recurrence (all batch rows, all steps) in one invocation.

    PyTorch LSTMCell gate order: i, f, g, o.  Gate axis padded so each gate
    occupies its own 128-lane group.
    """
    B, Hp = batch, hp

    # Hoisted input projection: one (S*B, D)@(D, 4*Hp) MXU matmul + bias for
    # every timestep of every batch row.  Rows are time-major: row = t*B + b.
    xg = (jnp.dot(x_ref[...], wih_ref[...],
                  preferred_element_type=jnp.float32) + b_ref[...])

    # Recurrent weights stay resident across the unrolled steps.
    # TODO(synk): if the bundle dump shows Mosaic re-staging this RHS into the
    # MXU every step, switch to weight-stationary pltpu.matmul_push_rhs /
    # matmul_acc_lhs / matmul_pop.
    whh = whh_ref[...]

    # State carried in registers, 128-lane padded (pad lanes stay exactly 0).
    h = h0_ref[...]                                    # (B, Hp)
    c = c0_ref[...]                                    # (B, Hp)

    # Fully unrolled recurrence (S is small & static).  For S beyond a few
    # dozen, switch to lax.fori_loop(..., unroll=4..8) carrying (h, c) with xg
    # read per step from a VMEM scratch via pl.ds to bound vreg live ranges.
    for t in range(seq_len):
        gates = xg[t * B:(t + 1) * B, :] + jnp.dot(
            h, whh, preferred_element_type=jnp.float32)        # (B, 4*Hp)

        # Each gate occupies its own 128-lane group -> slices start on vreg
        # boundaries: no lane rotates on the serial chain.
        gi = gates[:, 0 * Hp:1 * Hp]
        gf = gates[:, 1 * Hp:2 * Hp]
        gg = gates[:, 2 * Hp:3 * Hp]
        go = gates[:, 3 * Hp:4 * Hp]

        # sigmoid(x) = 0.5*(tanh(x/2) + 1): a single EUP push per gate
        # instead of exp followed by a dependent reciprocal.
        i_g = 0.5 * (jnp.tanh(0.5 * gi) + 1.0)
        f_g = 0.5 * (jnp.tanh(0.5 * gf) + 1.0)
        o_g = 0.5 * (jnp.tanh(0.5 * go) + 1.0)
        g_g = jnp.tanh(gg)

        c = f_g * c + i_g * g_g
        h = o_g * jnp.tanh(c)
        out_ref[t] = h                                 # lane-dense (B, Hp) store


def _lstm_batched_call(x_rows, w_ih, w_hh, b_ih, b_hh, h0, c0):
    """Run B independent sequences (sharing the LSTMCell weights) in one
    pallas_call.  x_rows: (B, S, D), each row already in processing order.
    Returns (B, S, H): hidden states in iteration order per row."""
    B, S, D = x_rows.shape
    H = h0.shape[-1]
    Hp = ((H + 127) // 128) * 128                      # 128-lane-align each gate

    # Time-major flatten so step t's rows are contiguous: row = t*B + b.
    x_flat = jnp.transpose(x_rows, (1, 0, 2)).reshape(S * B, D)

    wih_pad = _pad_gate_columns(jnp.asarray(w_ih, jnp.float32).T, H, Hp)   # (D, 4Hp)
    whh_pad = jnp.zeros((Hp, 4 * Hp), jnp.float32)
    whh_pad = whh_pad.at[:H, :].set(
        _pad_gate_columns(jnp.asarray(w_hh, jnp.float32).T, H, Hp))        # (Hp, 4Hp)
    b_pad = _pad_gate_columns(
        (b_ih + b_hh).reshape(1, 4 * H).astype(jnp.float32), H, Hp)        # (1, 4Hp)

    h0_pad = jnp.zeros((B, Hp), jnp.float32).at[:, :H].set(
        jnp.broadcast_to(h0, (B, H)))
    c0_pad = jnp.zeros((B, Hp), jnp.float32).at[:, :H].set(
        jnp.broadcast_to(c0, (B, H)))

    kernel = functools.partial(_lstm_seq_kernel, seq_len=S, batch=B, hp=Hp)
    out = pl.pallas_call(
        kernel,
        out_shape=jax.ShapeDtypeStruct((S, B, Hp), jnp.float32),
        grid=(1,),
        in_specs=[
            pl.BlockSpec((S * B, D), lambda i: (0, 0)),        # x (time-major)
            pl.BlockSpec((D, 4 * Hp), lambda i: (0, 0)),       # W_ih^T, padded
            pl.BlockSpec((Hp, 4 * Hp), lambda i: (0, 0)),      # W_hh^T, padded
            pl.BlockSpec((1, 4 * Hp), lambda i: (0, 0)),       # folded bias
            pl.BlockSpec((B, Hp), lambda i: (0, 0)),           # h0
            pl.BlockSpec((B, Hp), lambda i: (0, 0)),           # c0
        ],
        out_specs=pl.BlockSpec((S, B, Hp), lambda i: (0, 0, 0)),
        compiler_params=pltpu.CompilerParams(
            dimension_semantics=("arbitrary",)),
    )(x_flat, wih_pad, whh_pad, b_pad, h0_pad, c0_pad)

    return jnp.transpose(out[:, :, :H], (1, 0, 2))             # (B, S, H)


def words_lstm_b_forward(x, w_ih, w_hh, b_ih, b_hh, h0, c0, *, is_forward=True):
    """Module-faithful single-direction call.  x: (S, D).  Returns (S, 1, H)."""
    S, _ = x.shape
    H = h0.shape[-1]
    xr = x if is_forward else jnp.flip(x, axis=0)
    out = _lstm_batched_call(xr[None], w_ih, w_hh, b_ih, b_hh, h0, c0)  # (1,S,H)
    return out[0].reshape(S, 1, H)


def words_lstm_b_bidirectional(x, w_ih, w_hh, b_ih, b_hh, h0, c0):
    """Both directions (sharing the cell weights) fused into ONE kernel call.
    Returns (out_forward, out_backward), each (S, 1, H), identical to calling
    the module with is_forward=True / False on the same weights."""
    S, _ = x.shape
    H = h0.shape[-1]
    x_rows = jnp.stack([x, jnp.flip(x, axis=0)], axis=0)       # (2, S, D)
    out = _lstm_batched_call(x_rows, w_ih, w_hh, b_ih, b_hh, h0, c0)  # (2,S,H)
    return out[0].reshape(S, 1, H), out[1].reshape(S, 1, H)


def _reference_forward(x, w_ih, w_hh, b_ih, b_hh, h0, c0, is_forward=True):
    """Pure-JAX reference matching torch.nn.LSTMCell / WordsLstmB semantics."""
    S = x.shape[0]
    H = h0.shape[-1]
    h, c = h0, c0
    outs = []
    order = range(S) if is_forward else range(S - 1, -1, -1)
    for i in order:
        gates = x[i:i + 1] @ w_ih.T + b_ih + h @ w_hh.T + b_hh
        i_g = jax.nn.sigmoid(gates[:, 0:H])
        f_g = jax.nn.sigmoid(gates[:, H:2 * H])
        g_g = jnp.tanh(gates[:, 2 * H:3 * H])
        o_g = jax.nn.sigmoid(gates[:, 3 * H:4 * H])
        c = f_g * c + i_g * g_g
        h = o_g * jnp.tanh(c)
        outs.append(h)
    return jnp.stack(outs)   # (S, 1, H)


if __name__ == "__main__":
    # Small shapes implied by the module: sequence of feature vectors, batch=1.
    SEQ_LEN = 8
    INPUT_DIM = 32
    HIDDEN_DIM = 32

    key = jax.random.PRNGKey(0)
    kx, kwih, kwhh, kbih, kbhh, kh0, kc0 = jax.random.split(key, 7)

    x = jax.random.normal(kx, (SEQ_LEN, INPUT_DIM), dtype=jnp.float32)

    # nn.LSTMCell default init: U(-1/sqrt(H), 1/sqrt(H)) for all params.
    bound = 1.0 / jnp.sqrt(jnp.float32(HIDDEN_DIM))
    w_ih = jax.random.uniform(kwih, (4 * HIDDEN_DIM, INPUT_DIM),
                              minval=-bound, maxval=bound, dtype=jnp.float32)
    w_hh = jax.random.uniform(kwhh, (4 * HIDDEN_DIM, HIDDEN_DIM),
                              minval=-bound, maxval=bound, dtype=jnp.float32)
    b_ih = jax.random.uniform(kbih, (4 * HIDDEN_DIM,),
                              minval=-bound, maxval=bound, dtype=jnp.float32)
    b_hh = jax.random.uniform(kbhh, (4 * HIDDEN_DIM,),
                              minval=-bound, maxval=bound, dtype=jnp.float32)

    # torch.nn.init.xavier_normal_ on a (1, H) tensor: std = sqrt(2/(1+H)).
    # (Deterministic stand-in for the module's random in-forward init.)
    xavier_std = jnp.sqrt(2.0 / (1.0 + HIDDEN_DIM)).astype(jnp.float32)
    h0 = xavier_std * jax.random.normal(kh0, (1, HIDDEN_DIM), dtype=jnp.float32)
    c0 = xavier_std * jax.random.normal(kc0, (1, HIDDEN_DIM), dtype=jnp.float32)

    ref_f = _reference_forward(x, w_ih, w_hh, b_ih, b_hh, h0, c0,
                               is_forward=True)
    ref_b = _reference_forward(x, w_ih, w_hh, b_ih, b_hh, h0, c0,
                               is_forward=False)

    # --- Fused Bi-LSTM pair: both directions in ONE pallas_call. ---
    out_f, out_b = words_lstm_b_bidirectional(x, w_ih, w_hh, b_ih, b_hh,
                                              h0, c0)
    out_f = jax.block_until_ready(out_f)
    out_b = jax.block_until_ready(out_b)
    assert out_f.shape == (SEQ_LEN, 1, HIDDEN_DIM)
    assert out_b.shape == (SEQ_LEN, 1, HIDDEN_DIM)
    assert jnp.allclose(out_f, ref_f, atol=1e-5, rtol=1e-5)
    assert jnp.allclose(out_b, ref_b, atol=1e-5, rtol=1e-5)

    # --- Module-faithful single-direction calls (B=1). ---
    out_f1 = jax.block_until_ready(
        words_lstm_b_forward(x, w_ih, w_hh, b_ih, b_hh, h0, c0,
                             is_forward=True))
    out_b1 = jax.block_until_ready(
        words_lstm_b_forward(x, w_ih, w_hh, b_ih, b_hh, h0, c0,
                             is_forward=False))
    assert out_f1.shape == (SEQ_LEN, 1, HIDDEN_DIM)
    assert out_b1.shape == (SEQ_LEN, 1, HIDDEN_DIM)
    assert jnp.allclose(out_f1, ref_f, atol=1e-5, rtol=1e-5)
    assert jnp.allclose(out_b1, ref_b, atol=1e-5, rtol=1e-5)

    print("KERNEL_OK")
</pallas_src>

<mosaic_0001>
module attributes {stable_mosaic.version = 11 : i64} {
  func.func @_lstm_seq_kernel(%arg0: i32, %arg1: memref<16x32xf32, #tpu.memory_space<vmem>>, %arg2: memref<32x512xf32, #tpu.memory_space<vmem>>, %arg3: memref<128x512xf32, #tpu.memory_space<vmem>>, %arg4: memref<1x512xf32, #tpu.memory_space<vmem>>, %arg5: memref<2x128xf32, #tpu.memory_space<vmem>>, %arg6: memref<2x128xf32, #tpu.memory_space<vmem>>, %arg7: memref<8x2x128xf32, #tpu.memory_space<vmem>>) attributes {dimension_semantics = [#tpu.dimension_semantics<arbitrary>], iteration_bounds = array<i64: 1>, scalar_prefetch = 0 : i64, scratch_operands = 0 : i64, tpu.core_type = #tpu.core_type<tc>, window_params = [{pipeline_mode = #tpu.pipeline_mode<synchronous>, transform_indices = @transform_0, window_bounds = array<i64: 16, 32>}, {pipeline_mode = #tpu.pipeline_mode<synchronous>, transform_indices = @transform_1, window_bounds = array<i64: 32, 512>}, {pipeline_mode = #tpu.pipeline_mode<synchronous>, transform_indices = @transform_2, window_bounds = array<i64: 128, 512>}, {pipeline_mode = #tpu.pipeline_mode<synchronous>, transform_indices = @transform_3, window_bounds = array<i64: 1, 512>}, {pipeline_mode = #tpu.pipeline_mode<synchronous>, transform_indices = @transform_4, window_bounds = array<i64: 2, 128>}, {pipeline_mode = #tpu.pipeline_mode<synchronous>, transform_indices = @transform_5, window_bounds = array<i64: 2, 128>}, {pipeline_mode = #tpu.pipeline_mode<synchronous>, transform_indices = @transform_6, window_bounds = array<i64: 8, 2, 128>}]} {
    %c0 = arith.constant 0 : index
    %c0_0 = arith.constant 0 : index
    %0 = vector.load %arg1[%c0, %c0_0] : memref<16x32xf32, #tpu.memory_space<vmem>>, vector<16x32xf32>
    %c0_1 = arith.constant 0 : index
    %c0_2 = arith.constant 0 : index
    %1 = vector.load %arg2[%c0_1, %c0_2] : memref<32x512xf32, #tpu.memory_space<vmem>>, vector<32x512xf32>
    %cst = arith.constant dense<0.000000e+00> : vector<16x512xf32>
    %2 = tpu.matmul %0, %1, %cst {dimension_numbers = #tpu.dot_dimension_numbers<[1], [0], [0], [1], [0, 0, 1, 1], [], []>} : vector<16x32xf32>, vector<32x512xf32>, vector<16x512xf32> -> vector<16x512xf32>
    %c0_3 = arith.constant 0 : index
    %c0_4 = arith.constant 0 : index
    %3 = vector.load %arg4[%c0_3, %c0_4] : memref<1x512xf32, #tpu.memory_space<vmem>>, vector<1x512xf32>
    %4 = vector.broadcast %3 : vector<1x512xf32> to vector<16x512xf32>
    %5 = arith.addf %2, %4 : vector<16x512xf32>
    %c0_5 = arith.constant 0 : index
    %c0_6 = arith.constant 0 : index
    %6 = vector.load %arg3[%c0_5, %c0_6] : memref<128x512xf32, #tpu.memory_space<vmem>>, vector<128x512xf32>
    %c0_7 = arith.constant 0 : index
    %c0_8 = arith.constant 0 : index
    %7 = vector.load %arg5[%c0_7, %c0_8] : memref<2x128xf32, #tpu.memory_space<vmem>>, vector<2x128xf32>
    %c0_9 = arith.constant 0 : index
    %c0_10 = arith.constant 0 : index
    %8 = vector.load %arg6[%c0_9, %c0_10] : memref<2x128xf32, #tpu.memory_space<vmem>>, vector<2x128xf32>
    %9 = vector.extract_strided_slice %5 {offsets = [0, 0], sizes = [2, 512], strides = [1, 1]} : vector<16x512xf32> to vector<2x512xf32>
    %cst_11 = arith.constant dense<0.000000e+00> : vector<2x512xf32>
    %10 = tpu.matmul %7, %6, %cst_11 {dimension_numbers = #tpu.dot_dimension_numbers<[1], [0], [0], [1], [0, 0, 1, 1], [], []>} : vector<2x128xf32>, vector<128x512xf32>, vector<2x512xf32> -> vector<2x512xf32>
    %11 = arith.addf %9, %10 : vector<2x512xf32>
    %12 = vector.extract_strided_slice %11 {offsets = [0, 0], sizes = [2, 128], strides = [1, 1]} : vector<2x512xf32> to vector<2x128xf32>
    %13 = vector.extract_strided_slice %11 {offsets = [0, 128], sizes = [2, 128], strides = [1, 1]} : vector<2x512xf32> to vector<2x128xf32>
    %14 = vector.extract_strided_slice %11 {offsets = [0, 256], sizes = [2, 128], strides = [1, 1]} : vector<2x512xf32> to vector<2x128xf32>
    %15 = vector.extract_strided_slice %11 {offsets = [0, 384], sizes = [2, 128], strides = [1, 1]} : vector<2x512xf32> to vector<2x128xf32>
    %cst_12 = arith.constant 5.000000e-01 : f32
    %16 = vector.broadcast %cst_12 : f32 to vector<2x128xf32>
    %17 = arith.mulf %16, %12 : vector<2x128xf32>
    %18 = math.tanh %17 : vector<2x128xf32>
    %cst_13 = arith.constant 1.000000e+00 : f32
    %19 = vector.broadcast %cst_13 : f32 to vector<2x128xf32>
    %20 = arith.addf %18, %19 : vector<2x128xf32>
    %cst_14 = arith.constant 5.000000e-01 : f32
    %21 = vector.broadcast %cst_14 : f32 to vector<2x128xf32>
    %22 = arith.mulf %21, %20 : vector<2x128xf32>
    %cst_15 = arith.constant 5.000000e-01 : f32
    %23 = vector.broadcast %cst_15 : f32 to vector<2x128xf32>
    %24 = arith.mulf %23, %13 : vector<2x128xf32>
    %25 = math.tanh %24 : vector<2x128xf32>
    %cst_16 = arith.constant 1.000000e+00 : f32
    %26 = vector.broadcast %cst_16 : f32 to vector<2x128xf32>
    %27 = arith.addf %25, %26 : vector<2x128xf32>
    %cst_17 = arith.constant 5.000000e-01 : f32
    %28 = vector.broadcast %cst_17 : f32 to vector<2x128xf32>
    %29 = arith.mulf %28, %27 : vector<2x128xf32>
    %cst_18 = arith.constant 5.000000e-01 : f32
    %30 = vector.broadcast %cst_18 : f32 to vector<2x128xf32>
    %31 = arith.mulf %30, %15 : vector<2x128xf32>
    %32 = math.tanh %31 : vector<2x128xf32>
    %cst_19 = arith.constant 1.000000e+00 : f32
    %33 = vector.broadcast %cst_19 : f32 to vector<2x128xf32>
    %34 = arith.addf %32, %33 : vector<2x128xf32>
    %cst_20 = arith.constant 5.000000e-01 : f32
    %35 = vector.broadcast %cst_20 : f32 to vector<2x128xf32>
    %36 = arith.mulf %35, %34 : vector<2x128xf32>
    %37 = math.tanh %14 : vector<2x128xf32>
    %38 = arith.mulf %29, %8 : vector<2x128xf32>
    %39 = arith.mulf %22, %37 : vector<2x128xf32>
    %40 = arith.addf %38, %39 : vector<2x128xf32>
    %41 = math.tanh %40 : vector<2x128xf32>
    %42 = arith.mulf %36, %41 : vector<2x128xf32>
    %c0_21 = arith.constant 0 : index
    %c0_22 = arith.constant 0 : index
    %c0_23 = arith.constant 0 : index
    %43 = vector.load %arg7[%c0_21, %c0_22, %c0_23] : memref<8x2x128xf32, #tpu.memory_space<vmem>>, vector<1x2x128xf32>
    %44 = vector.shape_cast %43 : vector<1x2x128xf32> to vector<2x128xf32>
    %45 = vector.shape_cast %42 : vector<2x128xf32> to vector<1x2x128xf32>
    tpu.vector_store %arg7[%c0_21, %c0_22, %c0_23], %45 {strides = array<i32>} : memref<8x2x128xf32, #tpu.memory_space<vmem>>, vector<1x2x128xf32>,
    %46 = vector.extract_strided_slice %5 {offsets = [2, 0], sizes = [2, 512], strides = [1, 1]} : vector<16x512xf32> to vector<2x512xf32>
    %cst_24 = arith.constant dense<0.000000e+00> : vector<2x512xf32>
    %47 = tpu.matmul %42, %6, %cst_24 {dimension_numbers = #tpu.dot_dimension_numbers<[1], [0], [0], [1], [0, 0, 1, 1], [], []>} : vector<2x128xf32>, vector<128x512xf32>, vector<2x512xf32> -> vector<2x512xf32>
    %48 = arith.addf %46, %47 : vector<2x512xf32>
    %49 = vector.extract_strided_slice %48 {offsets = [0, 0], sizes = [2, 128], strides = [1, 1]} : vector<2x512xf32> to vector<2x128xf32>
    %50 = vector.extract_strided_slice %48 {offsets = [0, 128], sizes = [2, 128], strides = [1, 1]} : vector<2x512xf32> to vector<2x128xf32>
    %51 = vector.extract_strided_slice %48 {offsets = [0, 256], sizes = [2, 128], strides = [1, 1]} : vector<2x512xf32> to vector<2x128xf32>
    %52 = vector.extract_strided_slice %48 {offsets = [0, 384], sizes = [2, 128], strides = [1, 1]} : vector<2x512xf32> to vector<2x128xf32>
    %cst_25 = arith.constant 5.000000e-01 : f32
    %53 = vector.broadcast %cst_25 : f32 to vector<2x128xf32>
    %54 = arith.mulf %53, %49 : vector<2x128xf32>
    %55 = math.tanh %54 : vector<2x128xf32>
    %cst_26 = arith.constant 1.000000e+00 : f32
    %56 = vector.broadcast %cst_26 : f32 to vector<2x128xf32>
    %57 = arith.addf %55, %56 : vector<2x128xf32>
    %cst_27 = arith.constant 5.000000e-01 : f32
    %58 = vector.broadcast %cst_27 : f32 to vector<2x128xf32>
    %59 = arith.mulf %58, %57 : vector<2x128xf32>
    %cst_28 = arith.constant 5.000000e-01 : f32
    %60 = vector.broadcast %cst_28 : f32 to vector<2x128xf32>
    %61 = arith.mulf %60, %50 : vector<2x128xf32>
    %62 = math.tanh %61 : vector<2x128xf32>
    %cst_29 = arith.constant 1.000000e+00 : f32
    %63 = vector.broadcast %cst_29 : f32 to vector<2x128xf32>
    %64 = arith.addf %62, %63 : vector<2x128xf32>
    %cst_30 = arith.constant 5.000000e-01 : f32
    %65 = vector.broadcast %cst_30 : f32 to vector<2x128xf32>
    %66 = arith.mulf %65, %64 : vector<2x128xf32>
    %cst_31 = arith.constant 5.000000e-01 : f32
    %67 = vector.broadcast %cst_31 : f32 to vector<2x128xf32>
    %68 = arith.mulf %67, %52 : vector<2x128xf32>
    %69 = math.tanh %68 : vector<2x128xf32>
    %cst_32 = arith.constant 1.000000e+00 : f32
    %70 = vector.broadcast %cst_32 : f32 to vector<2x128xf32>
    %71 = arith.addf %69, %70 : vector<2x128xf32>
    %cst_33 = arith.constant 5.000000e-01 : f32
    %72 = vector.broadcast %cst_33 : f32 to vector<2x128xf32>
    %73 = arith.mulf %72, %71 : vector<2x128xf32>
    %74 = math.tanh %51 : vector<2x128xf32>
    %75 = arith.mulf %66, %40 : vector<2x128xf32>
    %76 = arith.mulf %59, %74 : vector<2x128xf32>
    %77 = arith.addf %75, %76 : vector<2x128xf32>
    %78 = math.tanh %77 : vector<2x128xf32>
    %79 = arith.mulf %73, %78 : vector<2x128xf32>
    %c1 = arith.constant 1 : index
    %c0_34 = arith.constant 0 : index
    %c0_35 = arith.constant 0 : index
    %80 = vector.load %arg7[%c1, %c0_34, %c0_35] : memref<8x2x128xf32, #tpu.memory_space<vmem>>, vector<1x2x128xf32>
    %81 = vector.shape_cast %80 : vector<1x2x128xf32> to vector<2x128xf32>
    %82 = vector.shape_cast %79 : vector<2x128xf32> to vector<1x2x128xf32>
    tpu.vector_store %arg7[%c1, %c0_34, %c0_35], %82 {strides = array<i32>} : memref<8x2x128xf32, #tpu.memory_space<vmem>>, vector<1x2x128xf32>,
    %83 = vector.extract_strided_slice %5 {offsets = [4, 0], sizes = [2, 512], strides = [1, 1]} : vector<16x512xf32> to vector<2x512xf32>
    %cst_36 = arith.constant dense<0.000000e+00> : vector<2x512xf32>
    %84 = tpu.matmul %79, %6, %cst_36 {dimension_numbers = #tpu.dot_dimension_numbers<[1], [0], [0], [1], [0, 0, 1, 1], [], []>} : vector<2x128xf32>, vector<128x512xf32>, vector<2x512xf32> -> vector<2x512xf32>
    %85 = arith.addf %83, %84 : vector<2x512xf32>
    %86 = vector.extract_strided_slice %85 {offsets = [0, 0], sizes = [2, 128], strides = [1, 1]} : vector<2x512xf32> to vector<2x128xf32>
    %87 = vector.extract_strided_slice %85 {offsets = [0, 128], sizes = [2, 128], strides = [1, 1]} : vector<2x512xf32> to vector<2x128xf32>
    %88 = vector.extract_strided_slice %85 {offsets = [0, 256], sizes = [2, 128], strides = [1, 1]} : vector<2x512xf32> to vector<2x128xf32>
    %89 = vector.extract_strided_slice %85 {offsets = [0, 384], sizes = [2, 128], strides = [1, 1]} : vector<2x512xf32> to vector<2x128xf32>
    %cst_37 = arith.constant 5.000000e-01 : f32
    %90 = vector.broadcast %cst_37 : f32 to vector<2x128xf32>
    %91 = arith.mulf %90, %86 : vector<2x128xf32>
    %92 = math.tanh %91 : vector<2x128xf32>
    %cst_38 = arith.constant 1.000000e+00 : f32
    %93 = vector.broadcast %cst_38 : f32 to vector<2x128xf32>
    %94 = arith.addf %92, %93 : vector<2x128xf32>
    %cst_39 = arith.constant 5.000000e-01 : f32
    %95 = vector.broadcast %cst_39 : f32 to vector<2x128xf32>
    %96 = arith.mulf %95, %94 : vector<2x128xf32>
    %cst_40 = arith.constant 5.000000e-01 : f32
    %97 = vector.broadcast %cst_40 : f32 to vector<2x128xf32>
    %98 = arith.mulf %97, %87 : vector<2x128xf32>
    %99 = math.tanh %98 : vector<2x128xf32>
    %cst_41 = arith.constant 1.000000e+00 : f32
    %100 = vector.broadcast %cst_41 : f32 to vector<2x128xf32>
    %101 = arith.addf %99, %100 : vector<2x128xf32>
    %cst_42 = arith.constant 5.000000e-01 : f32
    %102 = vector.broadcast %cst_42 : f32 to vector<2x128xf32>
    %103 = arith.mulf %102, %101 : vector<2x128xf32>
    %cst_43 = arith.constant 5.000000e-01 : f32
    %104 = vector.broadcast %cst_43 : f32 to vector<2x128xf32>
    %105 = arith.mulf %104, %89 : vector<2x128xf32>
    %106 = math.tanh %105 : vector<2x128xf32>
    %cst_44 = arith.constant 1.000000e+00 : f32
    %107 = vector.broadcast %cst_44 : f32 to vector<2x128xf32>
    %108 = arith.addf %106, %107 : vector<2x128xf32>
    %cst_45 = arith.constant 5.000000e-01 : f32
    %109 = vector.broadcast %cst_45 : f32 to vector<2x128xf32>
    %110 = arith.mulf %109, %108 : vector<2x128xf32>
    %111 = math.tanh %88 : vector<2x128xf32>
    %112 = arith.mulf %103, %77 : vector<2x128xf32>
    %113 = arith.mulf %96, %111 : vector<2x128xf32>
    %114 = arith.addf %112, %113 : vector<2x128xf32>
    %115 = math.tanh %114 : vector<2x128xf32>
    %116 = arith.mulf %110, %115 : vector<2x128xf32>
    %c2 = arith.constant 2 : index
    %c0_46 = arith.constant 0 : index
    %c0_47 = arith.constant 0 : index
    %117 = vector.load %arg7[%c2, %c0_46, %c0_47] : memref<8x2x128xf32, #tpu.memory_space<vmem>>, vector<1x2x128xf32>
    %118 = vector.shape_cast %117 : vector<1x2x128xf32> to vector<2x128xf32>
    %119 = vector.shape_cast %116 : vector<2x128xf32> to vector<1x2x128xf32>
    tpu.vector_store %arg7[%c2, %c0_46, %c0_47], %119 {strides = array<i32>} : memref<8x2x128xf32, #tpu.memory_space<vmem>>, vector<1x2x128xf32>,
    %120 = vector.extract_strided_slice %5 {offsets = [6, 0], sizes = [2, 512], strides = [1, 1]} : vector<16x512xf32> to vector<2x512xf32>
    %cst_48 = arith.constant dense<0.000000e+00> : vector<2x512xf32>
    %121 = tpu.matmul %116, %6, %cst_48 {dimension_numbers = #tpu.dot_dimension_numbers<[1], [0], [0], [1], [0, 0, 1, 1], [], []>} : vector<2x128xf32>, vector<128x512xf32>, vector<2x512xf32> -> vector<2x512xf32>
    %122 = arith.addf %120, %121 : vector<2x512xf32>
    %123 = vector.extract_strided_slice %122 {offsets = [0, 0], sizes = [2, 128], strides = [1, 1]} : vector<2x512xf32> to vector<2x128xf32>
    %124 = vector.extract_strided_slice %122 {offsets = [0, 128], sizes = [2, 128], strides = [1, 1]} : vector<2x512xf32> to vector<2x128xf32>
    %125 = vector.extract_strided_slice %122 {offsets = [0, 256], sizes = [2, 128], strides = [1, 1]} : vector<2x512xf32> to vector<2x128xf32>
    %126 = vector.extract_strided_slice %122 {offsets = [0, 384], sizes = [2, 128], strides = [1, 1]} : vector<2x512xf32> to vector<2x128xf32>
    %cst_49 = arith.constant 5.000000e-01 : f32
    %127 = vector.broadcast %cst_49 : f32 to vector<2x128xf32>
    %128 = arith.mulf %127, %123 : vector<2x128xf32>
    %129 = math.tanh %128 : vector<2x128xf32>
    %cst_50 = arith.constant 1.000000e+00 : f32
    %130 = vector.broadcast %cst_50 : f32 to vector<2x128xf32>
    %131 = arith.addf %129, %130 : vector<2x128xf32>
    %cst_51 = arith.constant 5.000000e-01 : f32
    %132 = vector.broadcast %cst_51 : f32 to vector<2x128xf32>
    %133 = arith.mulf %132, %131 : vector<2x128xf32>
    %cst_52 = arith.constant 5.000000e-01 : f32
    %134 = vector.broadcast %cst_52 : f32 to vector<2x128xf32>
    %135 = arith.mulf %134, %124 : vector<2x128xf32>
    %136 = math.tanh %135 : vector<2x128xf32>
    %cst_53 = arith.constant 1.000000e+00 : f32
    %137 = vector.broadcast %cst_53 : f32 to vector<2x128xf32>
    %138 = arith.addf %136, %137 : vector<2x128xf32>
    %cst_54 = arith.constant 5.000000e-01 : f32
    %139 = vector.broadcast %cst_54 : f32 to vector<2x128xf32>
    %140 = arith.mulf %139, %138 : vector<2x128xf32>
    %cst_55 = arith.constant 5.000000e-01 : f32
    %141 = vector.broadcast %cst_55 : f32 to vector<2x128xf32>
    %142 = arith.mulf %141, %126 : vector<2x128xf32>
    %143 = math.tanh %142 : vector<2x128xf32>
    %cst_56 = arith.constant 1.000000e+00 : f32
    %144 = vector.broadcast %cst_56 : f32 to vector<2x128xf32>
    %145 = arith.addf %143, %144 : vector<2x128xf32>
    %cst_57 = arith.constant 5.000000e-01 : f32
    %146 = vector.broadcast %cst_57 : f32 to vector<2x128xf32>
    %147 = arith.mulf %146, %145 : vector<2x128xf32>
    %148 = math.tanh %125 : vector<2x128xf32>
    %149 = arith.mulf %140, %114 : vector<2x128xf32>
    %150 = arith.mulf %133, %148 : vector<2x128xf32>
    %151 = arith.addf %149, %150 : vector<2x128xf32>
    %152 = math.tanh %151 : vector<2x128xf32>
    %153 = arith.mulf %147, %152 : vector<2x128xf32>
    %c3 = arith.constant 3 : index
    %c0_58 = arith.constant 0 : index
    %c0_59 = arith.constant 0 : index
    %154 = vector.load %arg7[%c3, %c0_58, %c0_59] : memref<8x2x128xf32, #tpu.memory_space<vmem>>, vector<1x2x128xf32>
    %155 = vector.shape_cast %154 : vector<1x2x128xf32> to vector<2x128xf32>
    %156 = vector.shape_cast %153 : vector<2x128xf32> to vector<1x2x128xf32>
    tpu.vector_store %arg7[%c3, %c0_58, %c0_59], %156 {strides = array<i32>} : memref<8x2x128xf32, #tpu.memory_space<vmem>>, vector<1x2x128xf32>,
    %157 = vector.extract_strided_slice %5 {offsets = [8, 0], sizes = [2, 512], strides = [1, 1]} : vector<16x512xf32> to vector<2x512xf32>
    %cst_60 = arith.constant dense<0.000000e+00> : vector<2x512xf32>
    %158 = tpu.matmul %153, %6, %cst_60 {dimension_numbers = #tpu.dot_dimension_numbers<[1], [0], [0], [1], [0, 0, 1, 1], [], []>} : vector<2x128xf32>, vector<128x512xf32>, vector<2x512xf32> -> vector<2x512xf32>
    %159 = arith.addf %157, %158 : vector<2x512xf32>
    %160 = vector.extract_strided_slice %159 {offsets = [0, 0], sizes = [2, 128], strides = [1, 1]} : vector<2x512xf32> to vector<2x128xf32>
    %161 = vector.extract_strided_slice %159 {offsets = [0, 128], sizes = [2, 128], strides = [1, 1]} : vector<2x512xf32> to vector<2x128xf32>
    %162 = vector.extract_strided_slice %159 {offsets = [0, 256], sizes = [2, 128], strides = [1, 1]} : vector<2x512xf32> to vector<2x128xf32>
    %163 = vector.extract_strided_slice %159 {offsets = [0, 384], sizes = [2, 128], strides = [1, 1]} : vector<2x512xf32> to vector<2x128xf32>
    %cst_61 = arith.constant 5.000000e-01 : f32
    %164 = vector.broadcast %cst_61 : f32 to vector<2x128xf32>
    %165 = arith.mulf %164, %160 : vector<2x128xf32>
    %166 = math.tanh %165 : vector<2x128xf32>
    %cst_62 = arith.constant 1.000000e+00 : f32
    %167 = vector.broadcast %cst_62 : f32 to vector<2x128xf32>
    %168 = arith.addf %166, %167 : vector<2x128xf32>
    %cst_63 = arith.constant 5.000000e-01 : f32
    %169 = vector.broadcast %cst_63 : f32 to vector<2x128xf32>
    %170 = arith.mulf %169, %168 : vector<2x128xf32>
    %cst_64 = arith.constant 5.000000e-01 : f32
    %171 = vector.broadcast %cst_64 : f32 to vector<2x128xf32>
    %172 = arith.mulf %171, %161 : vector<2x128xf32>
    %173 = math.tanh %172 : vector<2x128xf32>
    %cst_65 = arith.constant 1.000000e+00 : f32
    %174 = vector.broadcast %cst_65 : f32 to vector<2x128xf32>
    %175 = arith.addf %173, %174 : vector<2x128xf32>
    %cst_66 = arith.constant 5.000000e-01 : f32
    %176 = vector.broadcast %cst_66 : f32 to vector<2x128xf32>
    %177 = arith.mulf %176, %175 : vector<2x128xf32>
    %cst_67 = arith.constant 5.000000e-01 : f32
    %178 = vector.broadcast %cst_67 : f32 to vector<2x128xf32>
    %179 = arith.mulf %178, %163 : vector<2x128xf32>
    %180 = math.tanh %179 : vector<2x128xf32>
    %cst_68 = arith.constant 1.000000e+00 : f32
    %181 = vector.broadcast %cst_68 : f32 to vector<2x128xf32>
    %182 = arith.addf %180, %181 : vector<2x128xf32>
    %cst_69 = arith.constant 5.000000e-01 : f32
    %183 = vector.broadcast %cst_69 : f32 to vector<2x128xf32>
    %184 = arith.mulf %183, %182 : vector<2x128xf32>
    %185 = math.tanh %162 : vector<2x128xf32>
    %186 = arith.mulf %177, %151 : vector<2x128xf32>
    %187 = arith.mulf %170, %185 : vector<2x128xf32>
    %188 = arith.addf %186, %187 : vector<2x128xf32>
    %189 = math.tanh %188 : vector<2x128xf32>
    %190 = arith.mulf %184, %189 : vector<2x128xf32>
    %c4 = arith.constant 4 : index
    %c0_70 = arith.constant 0 : index
    %c0_71 = arith.constant 0 : index
    %191 = vector.load %arg7[%c4, %c0_70, %c0_71] : memref<8x2x128xf32, #tpu.memory_space<vmem>>, vector<1x2x128xf32>
    %192 = vector.shape_cast %191 : vector<1x2x128xf32> to vector<2x128xf32>
    %193 = vector.shape_cast %190 : vector<2x128xf32> to vector<1x2x128xf32>
    tpu.vector_store %arg7[%c4, %c0_70, %c0_71], %193 {strides = array<i32>} : memref<8x2x128xf32, #tpu.memory_space<vmem>>, vector<1x2x128xf32>,
    %194 = vector.extract_strided_slice %5 {offsets = [10, 0], sizes = [2, 512], strides = [1, 1]} : vector<16x512xf32> to vector<2x512xf32>
    %cst_72 = arith.constant dense<0.000000e+00> : vector<2x512xf32>
    %195 = tpu.matmul %190, %6, %cst_72 {dimension_numbers = #tpu.dot_dimension_numbers<[1], [0], [0], [1], [0, 0, 1, 1], [], []>} : vector<2x128xf32>, vector<128x512xf32>, vector<2x512xf32> -> vector<2x512xf32>
    %196 = arith.addf %194, %195 : vector<2x512xf32>
    %197 = vector.extract_strided_slice %196 {offsets = [0, 0], sizes = [2, 128], strides = [1, 1]} : vector<2x512xf32> to vector<2x128xf32>
    %198 = vector.extract_strided_slice %196 {offsets = [0, 128], sizes = [2, 128], strides = [1, 1]} : vector<2x512xf32> to vector<2x128xf32>
    %199 = vector.extract_strided_slice %196 {offsets = [0, 256], sizes = [2, 128], strides = [1, 1]} : vector<2x512xf32> to vector<2x128xf32>
    %200 = vector.extract_strided_slice %196 {offsets = [0, 384], sizes = [2, 128], strides = [1, 1]} : vector<2x512xf32> to vector<2x128xf32>
    %cst_73 = arith.constant 5.000000e-01 : f32
    %201 = vector.broadcast %cst_73 : f32 to vector<2x128xf32>
    %202 = arith.mulf %201, %197 : vector<2x128xf32>
    %203 = math.tanh %202 : vector<2x128xf32>
    %cst_74 = arith.constant 1.000000e+00 : f32
    %204 = vector.broadcast %cst_74 : f32 to vector<2x128xf32>
    %205 = arith.addf %203, %204 : vector<2x128xf32>
    %cst_75 = arith.constant 5.000000e-01 : f32
    %206 = vector.broadcast %cst_75 : f32 to vector<2x128xf32>
    %207 = arith.mulf %206, %205 : vector<2x128xf32>
    %cst_76 = arith.constant 5.000000e-01 : f32
    %208 = vector.broadcast %cst_76 : f32 to vector<2x128xf32>
    %209 = arith.mulf %208, %198 : vector<2x128xf32>
    %210 = math.tanh %209 : vector<2x128xf32>
    %cst_77 = arith.constant 1.000000e+00 : f32
    %211 = vector.broadcast %cst_77 : f32 to vector<2x128xf32>
    %212 = arith.addf %210, %211 : vector<2x128xf32>
    %cst_78 = arith.constant 5.000000e-01 : f32
    %213 = vector.broadcast %cst_78 : f32 to vector<2x128xf32>
    %214 = arith.mulf %213, %212 : vector<2x128xf32>
    %cst_79 = arith.constant 5.000000e-01 : f32
    %215 = vector.broadcast %cst_79 : f32 to vector<2x128xf32>
    %216 = arith.mulf %215, %200 : vector<2x128xf32>
    %217 = math.tanh %216 : vector<2x128xf32>
    %cst_80 = arith.constant 1.000000e+00 : f32
    %218 = vector.broadcast %cst_80 : f32 to vector<2x128xf32>
    %219 = arith.addf %217, %218 : vector<2x128xf32>
    %cst_81 = arith.constant 5.000000e-01 : f32
    %220 = vector.broadcast %cst_81 : f32 to vector<2x128xf32>
    %221 = arith.mulf %220, %219 : vector<2x128xf32>
    %222 = math.tanh %199 : vector<2x128xf32>
    %223 = arith.mulf %214, %188 : vector<2x128xf32>
    %224 = arith.mulf %207, %222 : vector<2x128xf32>
    %225 = arith.addf %223, %224 : vector<2x128xf32>
    %226 = math.tanh %225 : vector<2x128xf32>
    %227 = arith.mulf %221, %226 : vector<2x128xf32>
    %c5 = arith.constant 5 : index
    %c0_82 = arith.constant 0 : index
    %c0_83 = arith.constant 0 : index
    %228 = vector.load %arg7[%c5, %c0_82, %c0_83] : memref<8x2x128xf32, #tpu.memory_space<vmem>>, vector<1x2x128xf32>
    %229 = vector.shape_cast %228 : vector<1x2x128xf32> to vector<2x128xf32>
    %230 = vector.shape_cast %227 : vector<2x128xf32> to vector<1x2x128xf32>
    tpu.vector_store %arg7[%c5, %c0_82, %c0_83], %230 {strides = array<i32>} : memref<8x2x128xf32, #tpu.memory_space<vmem>>, vector<1x2x128xf32>,
    %231 = vector.extract_strided_slice %5 {offsets = [12, 0], sizes = [2, 512], strides = [1, 1]} : vector<16x512xf32> to vector<2x512xf32>
    %cst_84 = arith.constant dense<0.000000e+00> : vector<2x512xf32>
    %232 = tpu.matmul %227, %6, %cst_84 {dimension_numbers = #tpu.dot_dimension_numbers<[1], [0], [0], [1], [0, 0, 1, 1], [], []>} : vector<2x128xf32>, vector<128x512xf32>, vector<2x512xf32> -> vector<2x512xf32>
    %233 = arith.addf %231, %232 : vector<2x512xf32>
    %234 = vector.extract_strided_slice %233 {offsets = [0, 0], sizes = [2, 128], strides = [1, 1]} : vector<2x512xf32> to vector<2x128xf32>
    %235 = vector.extract_strided_slice %233 {offsets = [0, 128], sizes = [2, 128], strides = [1, 1]} : vector<2x512xf32> to vector<2x128xf32>
    %236 = vector.extract_strided_slice %233 {offsets = [0, 256], sizes = [2, 128], strides = [1, 1]} : vector<2x512xf32> to vector<2x128xf32>
    %237 = vector.extract_strided_slice %233 {offsets = [0, 384], sizes = [2, 128], strides = [1, 1]} : vector<2x512xf32> to vector<2x128xf32>
    %cst_85 = arith.constant 5.000000e-01 : f32
    %238 = vector.broadcast %cst_85 : f32 to vector<2x128xf32>
    %239 = arith.mulf %238, %234 : vector<2x128xf32>
    %240 = math.tanh %239 : vector<2x128xf32>
    %cst_86 = arith.constant 1.000000e+00 : f32
    %241 = vector.broadcast %cst_86 : f32 to vector<2x128xf32>
    %242 = arith.addf %240, %241 : vector<2x128xf32>
    %cst_87 = arith.constant 5.000000e-01 : f32
    %243 = vector.broadcast %cst_87 : f32 to vector<2x128xf32>
    %244 = arith.mulf %243, %242 : vector<2x128xf32>
    %cst_88 = arith.constant 5.000000e-01 : f32
    %245 = vector.broadcast %cst_88 : f32 to vector<2x128xf32>
    %246 = arith.mulf %245, %235 : vector<2x128xf32>
    %247 = math.tanh %246 : vector<2x128xf32>
    %cst_89 = arith.constant 1.000000e+00 : f32
    %248 = vector.broadcast %cst_89 : f32 to vector<2x128xf32>
    %249 = arith.addf %247, %248 : vector<2x128xf32>
    %cst_90 = arith.constant 5.000000e-01 : f32
    %250 = vector.broadcast %cst_90 : f32 to vector<2x128xf32>
    %251 = arith.mulf %250, %249 : vector<2x128xf32>
    %cst_91 = arith.constant 5.000000e-01 : f32
    %252 = vector.broadcast %cst_91 : f32 to vector<2x128xf32>
    %253 = arith.mulf %252, %237 : vector<2x128xf32>
    %254 = math.tanh %253 : vector<2x128xf32>
    %cst_92 = arith.constant 1.000000e+00 : f32
    %255 = vector.broadcast %cst_92 : f32 to vector<2x128xf32>
    %256 = arith.addf %254, %255 : vector<2x128xf32>
    %cst_93 = arith.constant 5.000000e-01 : f32
    %257 = vector.broadcast %cst_93 : f32 to vector<2x128xf32>
    %258 = arith.mulf %257, %256 : vector<2x128xf32>
    %259 = math.tanh %236 : vector<2x128xf32>
    %260 = arith.mulf %251, %225 : vector<2x128xf32>
    %261 = arith.mulf %244, %259 : vector<2x128xf32>
    %262 = arith.addf %260, %261 : vector<2x128xf32>
    %263 = math.tanh %262 : vector<2x128xf32>
    %264 = arith.mulf %258, %263 : vector<2x128xf32>
    %c6 = arith.constant 6 : index
    %c0_94 = arith.constant 0 : index
    %c0_95 = arith.constant 0 : index
    %265 = vector.load %arg7[%c6, %c0_94, %c0_95] : memref<8x2x128xf32, #tpu.memory_space<vmem>>, vector<1x2x128xf32>
    %266 = vector.shape_cast %265 : vector<1x2x128xf32> to vector<2x128xf32>
    %267 = vector.shape_cast %264 : vector<2x128xf32> to vector<1x2x128xf32>
    tpu.vector_store %arg7[%c6, %c0_94, %c0_95], %267 {strides = array<i32>} : memref<8x2x128xf32, #tpu.memory_space<vmem>>, vector<1x2x128xf32>,
    %268 = vector.extract_strided_slice %5 {offsets = [14, 0], sizes = [2, 512], strides = [1, 1]} : vector<16x512xf32> to vector<2x512xf32>
    %cst_96 = arith.constant dense<0.000000e+00> : vector<2x512xf32>
    %269 = tpu.matmul %264, %6, %cst_96 {dimension_numbers = #tpu.dot_dimension_numbers<[1], [0], [0], [1], [0, 0, 1, 1], [], []>} : vector<2x128xf32>, vector<128x512xf32>, vector<2x512xf32> -> vector<2x512xf32>
    %270 = arith.addf %268, %269 : vector<2x512xf32>
    %271 = vector.extract_strided_slice %270 {offsets = [0, 0], sizes = [2, 128], strides = [1, 1]} : vector<2x512xf32> to vector<2x128xf32>
    %272 = vector.extract_strided_slice %270 {offsets = [0, 128], sizes = [2, 128], strides = [1, 1]} : vector<2x512xf32> to vector<2x128xf32>
    %273 = vector.extract_strided_slice %270 {offsets = [0, 256], sizes = [2, 128], strides = [1, 1]} : vector<2x512xf32> to vector<2x128xf32>
    %274 = vector.extract_strided_slice %270 {offsets = [0, 384], sizes = [2, 128], strides = [1, 1]} : vector<2x512xf32> to vector<2x128xf32>
    %cst_97 = arith.constant 5.000000e-01 : f32
    %275 = vector.broadcast %cst_97 : f32 to vector<2x128xf32>
    %276 = arith.mulf %275, %271 : vector<2x128xf32>
    %277 = math.tanh %276 : vector<2x128xf32>
    %cst_98 = arith.constant 1.000000e+00 : f32
    %278 = vector.broadcast %cst_98 : f32 to vector<2x128xf32>
    %279 = arith.addf %277, %278 : vector<2x128xf32>
    %cst_99 = arith.constant 5.000000e-01 : f32
    %280 = vector.broadcast %cst_99 : f32 to vector<2x128xf32>
    %281 = arith.mulf %280, %279 : vector<2x128xf32>
    %cst_100 = arith.constant 5.000000e-01 : f32
    %282 = vector.broadcast %cst_100 : f32 to vector<2x128xf32>
    %283 = arith.mulf %282, %272 : vector<2x128xf32>
    %284 = math.tanh %283 : vector<2x128xf32>
    %cst_101 = arith.constant 1.000000e+00 : f32
    %285 = vector.broadcast %cst_101 : f32 to vector<2x128xf32>
    %286 = arith.addf %284, %285 : vector<2x128xf32>
    %cst_102 = arith.constant 5.000000e-01 : f32
    %287 = vector.broadcast %cst_102 : f32 to vector<2x128xf32>
    %288 = arith.mulf %287, %286 : vector<2x128xf32>
    %cst_103 = arith.constant 5.000000e-01 : f32
    %289 = vector.broadcast %cst_103 : f32 to vector<2x128xf32>
    %290 = arith.mulf %289, %274 : vector<2x128xf32>
    %291 = math.tanh %290 : vector<2x128xf32>
    %cst_104 = arith.constant 1.000000e+00 : f32
    %292 = vector.broadcast %cst_104 : f32 to vector<2x128xf32>
    %293 = arith.addf %291, %292 : vector<2x128xf32>
    %cst_105 = arith.constant 5.000000e-01 : f32
    %294 = vector.broadcast %cst_105 : f32 to vector<2x128xf32>
    %295 = arith.mulf %294, %293 : vector<2x128xf32>
    %296 = math.tanh %273 : vector<2x128xf32>
    %297 = arith.mulf %288, %262 : vector<2x128xf32>
    %298 = arith.mulf %281, %296 : vector<2x128xf32>
    %299 = arith.addf %297, %298 : vector<2x128xf32>
    %300 = math.tanh %299 : vector<2x128xf32>
    %301 = arith.mulf %295, %300 : vector<2x128xf32>
    %c7 = arith.constant 7 : index
    %c0_106 = arith.constant 0 : index
    %c0_107 = arith.constant 0 : index
    %302 = vector.load %arg7[%c7, %c0_106, %c0_107] : memref<8x2x128xf32, #tpu.memory_space<vmem>>, vector<1x2x128xf32>
    %303 = vector.shape_cast %302 : vector<1x2x128xf32> to vector<2x128xf32>
    %304 = vector.shape_cast %301 : vector<2x128xf32> to vector<1x2x128xf32>
    tpu.vector_store %arg7[%c7, %c0_106, %c0_107], %304 {strides = array<i32>} : memref<8x2x128xf32, #tpu.memory_space<vmem>>, vector<1x2x128xf32>,
    return
  }
  func.func @transform_0(%arg0: i32) -> (i32, i32) {
    %c0_i32 = arith.constant 0 : i32
    %c0_i32_0 = arith.constant 0 : i32
    %c0_i32_1 = arith.constant 0 : i32
    return %c0_i32, %c0_i32_0 : i32, i32
  }
  func.func @transform_1(%arg0: i32) -> (i32, i32) {
    %c0_i32 = arith.constant 0 : i32
    %c0_i32_0 = arith.constant 0 : i32
    %c0_i32_1 = arith.constant 0 : i32
    return %c0_i32, %c0_i32_0 : i32, i32
  }
  func.func @transform_2(%arg0: i32) -> (i32, i32) {
    %c0_i32 = arith.constant 0 : i32
    %c0_i32_0 = arith.constant 0 : i32
    %c0_i32_1 = arith.constant 0 : i32
    return %c0_i32, %c0_i32_0 : i32, i32
  }
  func.func @transform_3(%arg0: i32) -> (i32, i32) {
    %c0_i32 = arith.constant 0 : i32
    %c0_i32_0 = arith.constant 0 : i32
    %c0_i32_1 = arith.constant 0 : i32
    return %c0_i32, %c0_i32_0 : i32, i32
  }
  func.func @transform_4(%arg0: i32) -> (i32, i32) {
    %c0_i32 = arith.constant 0 : i32
    %c0_i32_0 = arith.constant 0 : i32
    %c0_i32_1 = arith.constant 0 : i32
    return %c0_i32, %c0_i32_0 : i32, i32
  }
  func.func @transform_5(%arg0: i32) -> (i32, i32) {
    %c0_i32 = arith.constant 0 : i32
    %c0_i32_0 = arith.constant 0 : i32
    %c0_i32_1 = arith.constant 0 : i32
    return %c0_i32, %c0_i32_0 : i32, i32
  }
  func.func @transform_6(%arg0: i32) -> (i32, i32, i32) {
    %c0_i32 = arith.constant 0 : i32
    %c0_i32_0 = arith.constant 0 : i32
    %c0_i32_1 = arith.constant 0 : i32
    %c0_i32_2 = arith.constant 0 : i32
    return %c0_i32, %c0_i32_0, %c0_i32_1 : i32, i32, i32
  }
}

</mosaic_0001>

<bundles_post_ra>
// kernel: tpu_custom_call.1
= control target key start
LH: loop header
LB: loop body
LE: loop exit
PB: predicated region body
PF: predicated region fallthrough
CT: control target
= control target key end

     0   :  { %11 = vsyncpa [#allocation3], 0  ;;  %s3027_s0 = inlined_call_operand.hbm [shape: f32[16,32], index: 0, kind: input, shape index: {}]   ;;  %s3028_s1 = inlined_call_operand.hbm [shape: f32[32,512], index: 1, kind: input, shape index: {}]   ;;  %s3029_s2 = inlined_call_operand.hbm [shape: f32[128,512], index: 2, kind: input, shape index: {}]   ;;  %s3030_s3 = inlined_call_operand.vmem [shape: f32[1,512], index: 3, kind: input, shape index: {}]   ;;  %s3031_s4 = inlined_call_operand.vmem [shape: f32[2,128], index: 4, kind: input, shape index: {}]   ;;  %s3032_s5 = inlined_call_operand.vmem [shape: f32[2,128], index: 5, kind: input, shape index: {}]   ;;  %s3033_s6 = inlined_call_operand.hbm [shape: f32[8,2,128], index: 6, kind: output, shape index: {}]  }
   0x1   :  { %12 = vsyncpa [#allocation6], 0 }
   0x2   :  { %13 = vsyncpa [#allocation4], 0  ;;  %s2501_s21 = smov [#allocation5]   ;;  %s2407_s25 = scalar_lea.hbm %s3028_s1, 2048 }
   0x3   :  { %s31_s22 = sshll.u32 %s2501_s21, 4  ;;  %p2408_p0 = scmp.ne.s32.totalorder %s3028_s1, %s2407_s25  ;;  %s32_s22 = int_to_ptr.vmem [resolvable:$true] %s31_s22 }
   0x4   :  { %p2411_p1 = scmp.lt.u32.totalorder %s2407_s25, %s3028_s1 }
   0x6   :  { %p2413_p2 = pnand %p2411_p1, %p2408_p0 }
   0x8   :  { %2416 = shalt.err (!%p2413_p2)
}
   0x9   :  { %s2417_s30 = scalar_lea.vmem %s32_s22, 2048  ;;  %p2422_p4 = scmp.lt.s32.totalorder %s32_s22, %s32_s22 }
   0xa   :  { %p2418_p3 = scmp.ne.s32.totalorder %s32_s22, %s2417_s30  ;;  %p2423_p5 = scmp.lt.s32.totalorder %s2417_s30, %s2417_s30 }
   0xc   :  { %p2424_p6 = por %p2423_p5, %p2422_p4 }
   0xe   :  { %p2425_p7 = pnand %p2424_p6, %p2418_p3 }
  0x10   :  { %2428 = shalt.err (!%p2425_p7)
}
  0x11   :  { %s2502_s7 = smov 512   ;;  %s2503_s8 = smov 32  }
  0x12   :  { %37 = dma.hbm_to_vmem [thread:$0]  %s3028_s1, 2048, %s32_s22, [#allocation6], %s2502_s7, %s2502_s7, %s2503_s8  }
  0x13   :  { %s2504_s11 = smov [#allocation2]   ;;  %s2429_s15 = scalar_lea.hbm %s3027_s0, 256 }
  0x14   :  { %s19_s12 = sshll.u32 %s2504_s11, 4  ;;  %p2430_p8 = scmp.ne.s32.totalorder %s3027_s0, %s2429_s15  ;;  %s20_s12 = int_to_ptr.vmem [resolvable:$true] %s19_s12 }
  0x15   :  { %p2433_p9 = scmp.lt.u32.totalorder %s2429_s15, %s3027_s0 }
  0x17   :  { %p2435_p10 = pnand %p2433_p9, %p2430_p8 }
  0x19   :  { %2438 = shalt.err (!%p2435_p10)
}
  0x1a   :  { %s2439_s20 = scalar_lea.vmem %s20_s12, 256  ;;  %p2444_p12 = scmp.lt.s32.totalorder %s20_s12, %s20_s12 }
  0x1b   :  { %p2440_p11 = scmp.ne.s32.totalorder %s20_s12, %s2439_s20  ;;  %p2445_p13 = scmp.lt.s32.totalorder %s2439_s20, %s2439_s20 }
  0x1d   :  { %p2446_p0 = por %p2445_p13, %p2444_p12 }
  0x1f   :  { %p2447_p1 = pnand %p2446_p0, %p2440_p11 }
  0x21   :  { %2450 = shalt.err (!%p2447_p1)
}
  0x22   :  { %s2505_s1 = smov 128   ;;  %s2506_s21 = smov 8  }
  0x23   :  { %25 = dma.hbm_to_vmem [thread:$0]  %s3027_s0, 256, %s20_s12, [#allocation3], %s2505_s1, %s2505_s1, %s2506_s21  }
  0x24   :  { %s2507_s24 = smov [#allocation7]   ;;  %s2451_s28 = scalar_lea.hbm %s3029_s2, 8192 }
  0x25   :  { %s43_s25 = sshll.u32 %s2507_s24, 4  ;;  %p2452_p2 = scmp.ne.s32.totalorder %s3029_s2, %s2451_s28  ;;  %s44_s25 = int_to_ptr.vmem [resolvable:$true] %s43_s25 }
  0x26   :  { %p2455_p3 = scmp.lt.u32.totalorder %s2451_s28, %s3029_s2 }
  0x28   :  { %p2457_p4 = pnand %p2455_p3, %p2452_p2 }
  0x2a   :  { %2460 = shalt.err (!%p2457_p4)
}
  0x2b   :  { %s2461_s11 = scalar_lea.vmem %s44_s25, 8192  ;;  %p2466_p6 = scmp.lt.s32.totalorder %s44_s25, %s44_s25 }
  0x2c   :  { %p2462_p5 = scmp.ne.s32.totalorder %s44_s25, %s2461_s11  ;;  %p2467_p7 = scmp.lt.s32.totalorder %s2461_s11, %s2461_s11 }
  0x2e   :  { %p2468_p8 = por %p2467_p7, %p2466_p6 }
  0x30   :  { %p2469_p9 = pnand %p2468_p8, %p2462_p5 }
  0x32   :  { %2472 = shalt.err (!%p2469_p9)
}
  0x33   :  { %49 = dma.hbm_to_vmem [thread:$0]  %s3029_s2, 8192, %s44_s25, [#allocation6], %s2502_s7, %s2502_s7, %s2503_s8  }
  0x34   :  { %2495 = dma.done.wait [#allocation3], 256  }
  0x35   :  { %2496 = vsyncadd [#allocation3], 4294967040 }
  0x36   :  { %2497 = dma.done.wait [#allocation6], 10240  }
  0x37   :  { %2498 = vsyncadd [#allocation6], 4294957056  ;;  %v2508_v0 = vmov 0.0   ;;  %v68_v1 = vld [vmem:[#allocation5 + $0x8] sm:$0xff]  ;;  %v70_v3 = vld [vmem:[#allocation5 + $0x18] sm:$0xff]  ;;  %vm105_vm0 = vcmask 261120  }
  0x38   :  { %176 = vmatprep.mubr.f32.mxu0 %v2508_v0  ;;  %253 = vmatprep.mubr.f32.mxu1 %v2508_v0  ;;  %v72_v2 = vld [vmem:[#allocation5 + $0x28] sm:$0xff]  ;;  %v74_v5 = vld [vmem:[#allocation5 + $0x38] sm:$0xff]  ;;  %v67_v6 = vld [vmem:[#allocation5] sm:$0xff] }
  0x39   :  { %v1789_v4 = vpack.c.bf16 %v72_v2, %v68_v1  ;;  %v71_v7 = vld [vmem:[#allocation5 + $0x20] sm:$0xff]  ;;  %v1797_v8 = vpack.c.bf16 %v74_v5, %v70_v3  ;;  %v69_v10 = vld [vmem:[#allocation5 + $0x10] sm:$0xff]  ;;  %v76_v12 = vld [vmem:[#allocation5 + $0x48] sm:$0xff] }
  0x3a   :  { %v1791_v9 = vpack.c.bf16 %v71_v7, %v67_v6  ;;  %v73_v11 = vld [vmem:[#allocation5 + $0x30] sm:$0xff]  ;;  %v80_v14 = vld [vmem:[#allocation5 + $0x68] sm:$0xff]  ;;  %v78_v15 = vld [vmem:[#allocation5 + $0x58] sm:$0xff] }
  0x3b   :  { %1790 = vmatprep.subr.bf16.mxu0 %v1789_v4  ;;  %v1799_v13 = vpack.c.bf16 %v73_v11, %v69_v10  ;;  %v82_v16 = vld [vmem:[#allocation5 + $0x78] sm:$0xff]  ;;  %1798 = vmatprep.subr.bf16.mxu1 %v1797_v8  ;;  %v1793_v17 = vpack.c.bf16 %v80_v14, %v76_v12  ;;  %v75_v19 = vld [vmem:[#allocation5 + $0x40] sm:$0xff]  ;;  %v77_v21 = vld [vmem:[#allocation5 + $0x50] sm:$0xff] }
  0x3c   :  { %1792 = vmatpush1.bf16.msra.mxu0 %v1791_v9  ;;  %v1801_v18 = vpack.c.bf16 %v82_v16, %v78_v15  ;;  %v79_v20 = vld [vmem:[#allocation5 + $0x60] sm:$0xff]  ;;  %v81_v23 = vld [vmem:[#allocation5 + $0x70] sm:$0xff]  ;;  %v267_v24 = vld [vmem:[#allocation7 + $0x8] sm:$0xff] }
  0x3d   :  { %1800 = vmatpush1.bf16.msra.mxu1 %v1799_v13  ;;  %v1795_v22 = vpack.c.bf16 %v79_v20, %v75_v19  ;;  %1794 = vmatprep.subr.bf16.mxu0 %v1793_v17  ;;  %v1803_v25 = vpack.c.bf16 %v81_v23, %v77_v21  ;;  %v65_v26 = vld [vmem:[#allocation2] sm:$0xff]  ;;  %v271_v27 = vld [vmem:[#allocation7 + $0x28] sm:$0xff]  ;;  %v269_v28 = vld [vmem:[#allocation7 + $0x18] sm:$0xff] }
  0x3e   :  { %1802 = vmatprep.subr.bf16.mxu1 %v1801_v18  ;;  %v273_v29 = vld [vmem:[#allocation7 + $0x38] sm:$0xff]  ;;  %v2590_v30 = vpack.c.bf16 %v271_v27, %v267_v24  ;;  %v266_v32 = vld [vmem:[#allocation7] sm:$0xff]  ;;  %v268_v34 = vld [vmem:[#allocation7 + $0x10] sm:$0xff] }
  0x3f   :  { %v2592_v31 = vpack.c.bf16 %v273_v29, %v269_v28  ;;  %v270_v33 = vld [vmem:[#allocation7 + $0x20] sm:$0xff]  ;;  %v272_v36 = vld [vmem:[#allocation7 + $0x30] sm:$0xff]  ;;  %v275_v37 = vld [vmem:[#allocation7 + $0x48] sm:$0xff] }
  0x40   :  { %1796 = vmatpush1.bf16.msra.mxu0 %v1795_v22  ;;  %v2594_v35 = vpack.c.bf16 %v270_v33, %v266_v32  ;;  %v279_v38 = vld [vmem:[#allocation7 + $0x68] sm:$0xff]  ;;  %v2597_v39 = vpack.c.bf16 %v272_v36, %v268_v34  ;;  %v277_v41 = vld [vmem:[#allocation7 + $0x58] sm:$0xff]  ;;  %v274_v43 = vld [vmem:[#allocation7 + $0x40] sm:$0xff] }
  0x41   :  { %1804 = vmatpush1.bf16.msra.mxu1 %v1803_v25  ;;  %1806 = vmatprep.subr.bf16.mxu0 %v2590_v30  ;;  %v2599_v40 = vpack.c.bf16 %v279_v38, %v275_v37  ;;  %v281_v42 = vld [vmem:[#allocation7 + $0x78] sm:$0xff]  ;;  %v278_v45 = vld [vmem:[#allocation7 + $0x60] sm:$0xff]  ;;  %v276_v46 = vld [vmem:[#allocation7 + $0x50] sm:$0xff] }
  0x42   :  { %1838 = vmatprep.subr.bf16.mxu1 %v2592_v31  ;;  %v2602_v44 = vpack.c.bf16 %v281_v42, %v277_v41  ;;  %v280_v47 = vld [vmem:[#allocation7 + $0x70] sm:$0xff]  ;;  %v283_v48 = vld [vmem:[#allocation7 + $0x88] sm:$0xff]  ;;  %v285_v50 = vld [vmem:[#allocation7 + $0x98] sm:$0xff]  ;;  %v2607_v51 = vpack.c.bf16 %v278_v45, %v274_v43 }
  0x43   :  { %1785 = vmatmul.mubr.msk.f32.vlgmr.msra.gmra.mrb[0].mxu0 %vm105_vm0, %v65_v26  ;;  %v287_v49 = vld [vmem:[#allocation7 + $0xa8] sm:$0xff]  ;;  %v289_v52 = vld [vmem:[#allocation7 + $0xb8] sm:$0xff]  ;;  %v2611_v53 = vpack.c.bf16 %v280_v47, %v276_v46  ;;  %v282_v55 = vld [vmem:[#allocation7 + $0x80] sm:$0xff] }
  0x44   :  { %1787 = vmatmul.mubr.msk.f32.vlgmr.msra.gmra.mrb[0].mxu1 %vm105_vm0, %v65_v26  ;;  %1808 = vmatpush1.bf16.msra.mxu0 %v2594_v35  ;;  %v2613_v54 = vpack.c.bf16 %v287_v49, %v283_v48  ;;  %v286_v56 = vld [vmem:[#allocation7 + $0xa0] sm:$0xff]  ;;  %v284_v57 = vld [vmem:[#allocation7 + $0x90] sm:$0xff]  ;;  %v2616_v58 = vpack.c.bf16 %v289_v52, %v285_v50  ;;  %v291_v60 = vld [vmem:[#allocation7 + $0xc8] sm:$0xff] }
  0x45   :  { %1840 = vmatpush1.bf16.msra.mxu1 %v2597_v39  ;;  %1810 = vmatprep.subr.bf16.mxu0 %v2599_v40  ;;  %v288_v59 = vld [vmem:[#allocation7 + $0xb0] sm:$0xff]  ;;  %v295_v61 = vld [vmem:[#allocation7 + $0xe8] sm:$0xff]  ;;  %v293_v62 = vld [vmem:[#allocation7 + $0xd8] sm:$0xff]  ;;  %v2621_v1 = vpack.c.bf16 %v286_v56, %v282_v55 }
  0x46   :  { %1842 = vmatprep.subr.bf16.mxu1 %v2602_v44  ;;  %182 = vmatprep.mubr.f32.mxu0 %v2508_v0  ;;  %v297_v63 = vld [vmem:[#allocation7 + $0xf8] sm:$0xff]  ;;  %v2625_v2 = vpack.c.bf16 %v288_v59, %v284_v57  ;;  %v2627_v3 = vpack.c.bf16 %v295_v61, %v291_v60  ;;  %v290_v4 = vld [vmem:[#allocation7 + $0xc0] sm:$0xff]  ;;  %v292_v6 = vld [vmem:[#allocation7 + $0xd0] sm:$0xff] }
  0x47   :  { %259 = vmatprep.mubr.f32.mxu1 %v2508_v0  ;;  %v294_v5 = vld [vmem:[#allocation7 + $0xe0] sm:$0xff]  ;;  %v2630_v7 = vpack.c.bf16 %v297_v63, %v293_v62  ;;  %v296_v8 = vld [vmem:[#allocation7 + $0xf0] sm:$0xff]  ;;  %v299_v9 = vld [vmem:[#allocation7 + $0x108] sm:$0xff] }
  0x48   :  { %1812 = vmatpush1.bf16.msra.mxu0 %v2607_v51  ;;  %v303_v10 = vld [vmem:[#allocation7 + $0x128] sm:$0xff]  ;;  %v301_v11 = vld [vmem:[#allocation7 + $0x118] sm:$0xff]  ;;  %v2633_v13 = vpack.c.bf16 %v294_v5, %v290_v4  ;;  %v2637_v14 = vpack.c.bf16 %v296_v8, %v292_v6  ;;  %v298_v16 = vld [vmem:[#allocation7 + $0x100] sm:$0xff] }
  0x49   :  { %1844 = vmatpush1.bf16.msra.mxu1 %v2611_v53  ;;  %1814 = vmatprep.subr.bf16.mxu0 %v2613_v54  ;;  %v305_v12 = vld [vmem:[#allocation7 + $0x138] sm:$0xff]  ;;  %v2639_v15 = vpack.c.bf16 %v303_v10, %v299_v9  ;;  %v302_v17 = vld [vmem:[#allocation7 + $0x120] sm:$0xff]  ;;  %v300_v18 = vld [vmem:[#allocation7 + $0x110] sm:$0xff] }
  0x4a   :  { %1846 = vmatprep.subr.bf16.mxu1 %v2616_v58  ;;  %v2642_v19 = vpack.c.bf16 %v305_v12, %v301_v11  ;;  %v304_v20 = vld [vmem:[#allocation7 + $0x130] sm:$0xff]  ;;  %v307_v21 = vld [vmem:[#allocation7 + $0x148] sm:$0xff]  ;;  %v309_v23 = vld [vmem:[#allocation7 + $0x158] sm:$0xff]  ;;  %v2645_v25 = vpack.c.bf16 %v302_v17, %v298_v16 }
  0x4b   :  { %v311_v22 = vld [vmem:[#allocation7 + $0x168] sm:$0xff]  ;;  %v313_v24 = vld [vmem:[#allocation7 + $0x178] sm:$0xff]  ;;  %v2649_v27 = vpack.c.bf16 %v304_v20, %v300_v18  ;;  %v306_v29 = vld [vmem:[#allocation7 + $0x140] sm:$0xff]  ;;  %v85_v18 = vlaneseq }
  0x4c   :  { %1816 = vmatpush1.bf16.msra.mxu0 %v2621_v1  ;;  %v66_v26 = vld [vmem:[#allocation2 + $0x8] sm:$0xff]  ;;  %v2651_v28 = vpack.c.bf16 %v311_v22, %v307_v21  ;;  %v310_v32 = vld [vmem:[#allocation7 + $0x160] sm:$0xff]  ;;  %v308_v33 = vld [vmem:[#allocation7 + $0x150] sm:$0xff]  ;;  %v2654_v34 = vpack.c.bf16 %v313_v24, %v309_v23 }
  0x4d   :  { %1848 = vmatpush1.bf16.msra.mxu1 %v2625_v2  ;;  %1818 = vmatprep.subr.bf16.mxu0 %v2627_v3  ;;  %v312_v36 = vld [vmem:[#allocation7 + $0x170] sm:$0xff]  ;;  %v315_v37 = vld [vmem:[#allocation7 + $0x188] sm:$0xff]  ;;  %v317_v41 = vld [vmem:[#allocation7 + $0x198] sm:$0xff]  ;;  %v2660_v43 = vpack.c.bf16 %v310_v32, %v306_v29  ;;  %v86_v21 = vshrl.u32 %v85_v18, 7 }
  0x4e   :  { %1850 = vmatprep.subr.bf16.mxu1 %v2630_v7  ;;  %v319_v38 = vld [vmem:[#allocation7 + $0x1a8] sm:$0xff]  ;;  %1786 = vmatmul.mubr.msk.f32.gmra.mrb[2].mxu0 %vm105_vm0, %v66_v26  ;;  %v321_v42 = vld [vmem:[#allocation7 + $0x1b8] sm:$0xff]  ;;  %v2665_v45 = vpack.c.bf16 %v312_v36, %v308_v33  ;;  %v314_v47 = vld [vmem:[#allocation7 + $0x180] sm:$0xff] }
  0x4f   :  { %1788 = vmatmul.mubr.msk.f32.gmra.mrb[2].mxu1 %vm105_vm0, %v66_v26  ;;  %396 = vmatprep.mubr.f32.mxu0 %v2508_v0  ;;  %v2667_v46 = vpack.c.bf16 %v319_v38, %v315_v37  ;;  %v318_v48 = vld [vmem:[#allocation7 + $0x1a0] sm:$0xff]  ;;  %v316_v49 = vld [vmem:[#allocation7 + $0x190] sm:$0xff]  ;;  %v2670_v50 = vpack.c.bf16 %v321_v42, %v317_v41  ;;  %v323_v55 = vld [vmem:[#allocation7 + $0x1c8] sm:$0xff]  ;;  %v87_v22 = vsub.s32 0, %v86_v21  ;;  %v91_v24 = vsub.s32 1, %v86_v21 }
  0x50   :  { %1820 = vmatpush1.bf16.msra.mxu0 %v2633_v13  ;;  %467 = vmatprep.mubr.f32.mxu1 %v2508_v0  ;;  %v320_v52 = vld [vmem:[#allocation7 + $0x1b0] sm:$0xff]  ;;  %v327_v56 = vld [vmem:[#allocation7 + $0x1e8] sm:$0xff]  ;;  %v325_v57 = vld [vmem:[#allocation7 + $0x1d8] sm:$0xff]  ;;  %v2673_v60 = vpack.c.bf16 %v318_v48, %v314_v47  ;;  %v95_v26 = vsub.s32 2, %v86_v21  ;;  %v99_v29 = vsub.s32 3, %v86_v21 }
  0x51   :  { %1852 = vmatpush1.bf16.msra.mxu1 %v2637_v14  ;;  %1822 = vmatprep.subr.bf16.mxu0 %v2639_v15  ;;  %v329_v59 = vld [vmem:[#allocation7 + $0x1f8] sm:$0xff]  ;;  %v2677_v61 = vpack.c.bf16 %v320_v52, %v316_v49  ;;  %v2679_v62 = vpack.c.bf16 %v327_v56, %v323_v55  ;;  %v322_v63 = vld [vmem:[#allocation7 + $0x1c0] sm:$0xff]  ;;  %v324_v6 = vld [vmem:[#allocation7 + $0x1d0] sm:$0xff] }
  0x52   :  { %1854 = vmatprep.subr.bf16.mxu1 %v2642_v19  ;;  %v326_v4 = vld [vmem:[#allocation7 + $0x1e0] sm:$0xff]  ;;  %v2682_v5 = vpack.c.bf16 %v329_v59, %v325_v57  ;;  %v328_v8 = vld [vmem:[#allocation7 + $0x1f0] sm:$0xff] }
  0x53   :  { %v2685_v9 = vpack.c.bf16 %v326_v4, %v322_v63  ;;  %v2689_v10 = vpack.c.bf16 %v328_v8, %v324_v6  ;;  %v330_v11 = vld [vmem:[%s3031_s4] sm:$0x3] }
  0x54   :  { %1824 = vmatpush1.bf16.msra.mxu0 %v2645_v25  ;;  %v83_v23 = vld [vmem:[%s3030_s3] sm:$0xf] }
  0x55   :  { %1856 = vmatpush1.bf16.msra.mxu1 %v2649_v27  ;;  %1826 = vmatprep.subr.bf16.mxu0 %v2651_v28  ;;  %v88_v32 = vrot.slane %v83_v23, %v87_v22  ;;  %v92_v33 = vrot.slane %v83_v23, %v91_v24  ;;  %v96_v36 = vrot.slane %v83_v23, %v95_v26 }
  0x56   :  { %1858 = vmatprep.subr.bf16.mxu1 %v2654_v34  ;;  %v100_v38 = vrot.slane %v83_v23, %v99_v29 }
  0x58   :  { %1828 = vmatpush1.bf16.msra.mxu0 %v2660_v43 }
  0x59   :  { %1860 = vmatpush1.bf16.msra.mxu1 %v2665_v45  ;;  %1830 = vmatprep.subr.bf16.mxu0 %v2667_v46 }
  0x5a   :  { %1862 = vmatprep.subr.bf16.mxu1 %v2670_v50 }
  0x5c   :  { %1832 = vmatpush1.bf16.msra.mxu0 %v2673_v60 }
  0x5d   :  { %1864 = vmatpush1.bf16.msra.mxu1 %v2677_v61  ;;  %1834 = vmatprep.subr.bf16.mxu0 %v2679_v62 }
  0x5e   :  { %1866 = vmatprep.subr.bf16.mxu1 %v2682_v5 }
  0x60   :  { %1836 = vmatpush1.bf16.msra.mxu0 %v2685_v9 }
  0x61   :  { %1868 = vmatpush1.bf16.msra.mxu1 %v2689_v10  ;;  %1870 = vmatprep.subr.bf16.mxu0 %v2590_v30 }
  0x62   :  { %1902 = vmatprep.subr.bf16.mxu1 %v2592_v31 }
  0x63   :  { %397 = vmatmul.mubr.f32.vlgmr.msra.gmra.mrb[4].mxu0 %v330_v11 }
  0x64   :  { %468 = vmatmul.mubr.f32.vlgmr.msra.gmra.mrb[4].mxu1 %v330_v11  ;;  %1872 = vmatpush1.bf16.msra.mxu0 %v2594_v35 }
  0x65   :  { %1904 = vmatpush1.bf16.msra.mxu1 %v2597_v39  ;;  %1874 = vmatprep.subr.bf16.mxu0 %v2599_v40 }
  0x66   :  { %1906 = vmatprep.subr.bf16.mxu1 %v2602_v44  ;;  %561 = vmatprep.mubr.f32.mxu0 %v2508_v0 }
  0x67   :  { %632 = vmatprep.mubr.f32.mxu1 %v2508_v0 }
  0x68   :  { %1876 = vmatpush1.bf16.msra.mxu0 %v2607_v51 }
  0x69   :  { %1908 = vmatpush1.bf16.msra.mxu1 %v2611_v53  ;;  %1878 = vmatprep.subr.bf16.mxu0 %v2613_v54 }
  0x6a   :  { %1910 = vmatprep.subr.bf16.mxu1 %v2616_v58 }
  0x6c   :  { %1880 = vmatpush1.bf16.msra.mxu0 %v2621_v1 }
  0x6d   :  { %1912 = vmatpush1.bf16.msra.mxu1 %v2625_v2  ;;  %1882 = vmatprep.subr.bf16.mxu0 %v2627_v3 }
  0x6e   :  { %1914 = vmatprep.subr.bf16.mxu1 %v2630_v7 }
  0x70   :  { %1884 = vmatpush1.bf16.msra.mxu0 %v2633_v13 }
  0x71   :  { %1916 = vmatpush1.bf16.msra.mxu1 %v2637_v14  ;;  %1886 = vmatprep.subr.bf16.mxu0 %v2639_v15 }
  0x72   :  { %1918 = vmatprep.subr.bf16.mxu1 %v2642_v19 }
  0x74   :  { %1888 = vmatpush1.bf16.msra.mxu0 %v2645_v25 }
  0x75   :  { %1920 = vmatpush1.bf16.msra.mxu1 %v2649_v27  ;;  %1890 = vmatprep.subr.bf16.mxu0 %v2651_v28 }
  0x76   :  { %1922 = vmatprep.subr.bf16.mxu1 %v2654_v34 }
  0x78   :  { %1892 = vmatpush1.bf16.msra.mxu0 %v2660_v43 }
  0x79   :  { %1924 = vmatpush1.bf16.msra.mxu1 %v2665_v45  ;;  %1894 = vmatprep.subr.bf16.mxu0 %v2667_v46 }
  0x7a   :  { %1926 = vmatprep.subr.bf16.mxu1 %v2670_v50 }
  0x7c   :  { %1896 = vmatpush1.bf16.msra.mxu0 %v2673_v60 }
  0x7d   :  { %1928 = vmatpush1.bf16.msra.mxu1 %v2677_v61  ;;  %1898 = vmatprep.subr.bf16.mxu0 %v2679_v62 }
  0x7e   :  { %1930 = vmatprep.subr.bf16.mxu1 %v2682_v5 }
  0x80   :  { %1900 = vmatpush1.bf16.msra.mxu0 %v2685_v9 }
  0x81   :  { %1932 = vmatpush1.bf16.msra.mxu1 %v2689_v10  ;;  %1934 = vmatprep.subr.bf16.mxu0 %v2590_v30 }
  0x82   :  { %1966 = vmatprep.subr.bf16.mxu1 %v2592_v31 }
 0x116   :  { %v178_v12 = vpop.f32.mrb[0].mxu0 }
 0x117   :  { %v180_v16 = vpop.f32.mrb[1].mxu0  ;;  %v255_v17 = vpop.f32.mrb[0].mxu1  ;;  %v2744_v56 = vadd.f32 %v178_v12, %v88_v32 }
 0x118   :  { %v257_v20 = vpop.f32.mrb[1].mxu1  ;;  %v2746_v57 = vadd.f32 %v180_v16, %v92_v33  ;;  %v2750_v18 = vadd.f32 %v255_v17, %v96_v36  ;;  %v331_v17 = vld [vmem:[%s3032_s5] sm:$0x3]  ;;  %s2509_s5 = smov [#allocation8]  }
 0x119   :  { %v2753_v12 = vadd.f32 %v257_v20, %v100_v38  ;;  %s1772_s15 = sshll.u32 %s2509_s5, 4  ;;  %s1773_s15 = int_to_ptr.vmem [resolvable:$true] %s1772_s15 }
 0x11a   :  { %s2473_s16 = scalar_lea.vmem %s1773_s15, 256  ;;  %p2478_p11 = scmp.lt.s32.totalorder %s1773_s15, %s1773_s15 }
 0x11b   :  { %p2474_p10 = scmp.ne.s32.totalorder %s1773_s15, %s2473_s16  ;;  %p2479_p12 = scmp.lt.s32.totalorder %s2473_s16, %s2473_s16 }
 0x11d   :  { %p2480_p13 = por %p2479_p12, %p2478_p11 }
 0x11f   :  { %p2481_p0 = pnand %p2480_p13, %p2474_p10 }
 0x121   :  { %v184_v37 = vpop.f32.mrb[2].mxu0 }
 0x122   :  { %v2736_v41 = vadd.f32 %v184_v37, %v88_v32  ;;  %v186_v42 = vpop.f32.mrb[3].mxu0  ;;  %v261_v47 = vpop.f32.mrb[2].mxu1 }
 0x123   :  { %v2738_v48 = vadd.f32 %v186_v42, %v92_v33  ;;  %v2740_v49 = vadd.f32 %v261_v47, %v96_v36  ;;  %v263_v52 = vpop.f32.mrb[3].mxu1 }
 0x124   :  { %v2742_v55 = vadd.f32 %v263_v52, %v100_v38 }
 0x136   :  { %v398_v59 = vpop.f32.mrb[4].mxu0 }
 0x137   :  { %v474_v63 = vadd.f32 %v398_v59, %v2744_v56  ;;  %v469_v4 = vpop.f32.mrb[4].mxu1  ;;  %v400_v6 = vpop.f32.mrb[5].mxu0 }
 0x138   :  { %v475_v8 = vadd.f32 %v400_v6, %v2746_v57  ;;  %v471_v11 = vpop.f32.mrb[5].mxu1  ;;  %v476_v23 = vadd.f32 %v469_v4, %v2750_v18 }
 0x139   :  { %v478_v21 = vmul.f32 0.5, %v474_v63  ;;  %v477_v16 = vadd.f32 %v471_v11, %v2753_v12 }
 0x13a   :  { %v482_v22 = vmul.f32 0.5, %v475_v8 }
 0x13b   :  { %2327 = vtanh.f32 %v478_v21  ;;  %v486_v24 = vmul.f32 0.5, %v477_v16 }
 0x13c   :  { %2329 = vtanh.f32 %v482_v22 }
 0x13d   :  { %2331 = vtanh.f32 %v476_v23 }
 0x13e   :  { %2333 = vtanh.f32 %v486_v24 }
 0x145   :  { %v2328_v26 = vpop.eup %2327 }
 0x146   :  { %v2330_v29 = vpop.eup %2329  ;;  %v480_v32 = vadd.f32 1.0, %v2328_v26 }
 0x147   :  { %v484_v33 = vadd.f32 1.0, %v2330_v29  ;;  %v2332_v36 = vpop.eup %2331 }
 0x148   :  { %v481_v37 = vmul.f32 0.5, %v480_v32  ;;  %v2334_v38 = vpop.eup %2333 }
 0x149   :  { %v485_v42 = vmul.f32 0.5, %v484_v33  ;;  %v488_v59 = vadd.f32 1.0, %v2334_v38 }
 0x14a   :  { %v492_v47 = vmul.f32 %v2332_v36, %v481_v37 }
 0x14b   :  { %v491_v52 = vmul.f32 %v485_v42, %v331_v17  ;;  %v489_v63 = vmul.f32 0.5, %v488_v59 }
 0x14d   :  { %v2759_v20 = vadd.f32 %v492_v47, %v491_v52 }
 0x14f   :  { %2335 = vtanh.f32 %v2759_v20 }
 0x159   :  { %v2336_v4 = vpop.eup %2335 }
 0x15a   :  { %v495_v6 = vmul.f32 %v2336_v4, %v489_v63 }
 0x15c   :  { %496 = vst [vmem:[#allocation8] sm:$0x3] %v495_v6  ;;  %562 = vmatmul.mubr.f32.vlgmr.msra.gmra.mrb[6].mxu0 %v495_v6  ;;  %633 = vmatmul.mubr.f32.vlgmr.msra.gmra.mrb[6].mxu1 %v495_v6 }
 0x15d   :  { %1936 = vmatpush1.bf16.msra.mxu0 %v2594_v35  ;;  %1968 = vmatpush1.bf16.msra.mxu1 %v2597_v39 }
 0x15e   :  { %1938 = vmatprep.subr.bf16.mxu0 %v2599_v40  ;;  %1970 = vmatprep.subr.bf16.mxu1 %v2602_v44 }
 0x15f   :  { %745 = vmatprep.mubr.f32.mxu0 %v2508_v0  ;;  %816 = vmatprep.mubr.f32.mxu1 %v2508_v0 }
 0x161   :  { %1940 = vmatpush1.bf16.msra.mxu0 %v2607_v51  ;;  %1972 = vmatpush1.bf16.msra.mxu1 %v2611_v53 }
 0x162   :  { %1942 = vmatprep.subr.bf16.mxu0 %v2613_v54  ;;  %1974 = vmatprep.subr.bf16.mxu1 %v2616_v58 }
 0x165   :  { %1944 = vmatpush1.bf16.msra.mxu0 %v2621_v1  ;;  %1976 = vmatpush1.bf16.msra.mxu1 %v2625_v2 }
 0x166   :  { %1946 = vmatprep.subr.bf16.mxu0 %v2627_v3  ;;  %1978 = vmatprep.subr.bf16.mxu1 %v2630_v7 }
 0x169   :  { %1948 = vmatpush1.bf16.msra.mxu0 %v2633_v13  ;;  %1980 = vmatpush1.bf16.msra.mxu1 %v2637_v14 }
 0x16a   :  { %1950 = vmatprep.subr.bf16.mxu0 %v2639_v15  ;;  %1982 = vmatprep.subr.bf16.mxu1 %v2642_v19 }
 0x16d   :  { %1952 = vmatpush1.bf16.msra.mxu0 %v2645_v25  ;;  %1984 = vmatpush1.bf16.msra.mxu1 %v2649_v27 }
 0x16e   :  { %1954 = vmatprep.subr.bf16.mxu0 %v2651_v28  ;;  %1986 = vmatprep.subr.bf16.mxu1 %v2654_v34 }
 0x171   :  { %1956 = vmatpush1.bf16.msra.mxu0 %v2660_v43  ;;  %1988 = vmatpush1.bf16.msra.mxu1 %v2665_v45 }
 0x172   :  { %1958 = vmatprep.subr.bf16.mxu0 %v2667_v46  ;;  %1990 = vmatprep.subr.bf16.mxu1 %v2670_v50 }
 0x175   :  { %1960 = vmatpush1.bf16.msra.mxu0 %v2673_v60  ;;  %1992 = vmatpush1.bf16.msra.mxu1 %v2677_v61 }
 0x176   :  { %1962 = vmatprep.subr.bf16.mxu0 %v2679_v62  ;;  %1994 = vmatprep.subr.bf16.mxu1 %v2682_v5 }
 0x179   :  { %1964 = vmatpush1.bf16.msra.mxu0 %v2685_v9  ;;  %1996 = vmatpush1.bf16.msra.mxu1 %v2689_v10 }
 0x17a   :  { %1998 = vmatprep.subr.bf16.mxu0 %v2590_v30  ;;  %2030 = vmatprep.subr.bf16.mxu1 %v2592_v31 }
 0x22f   :  { %v563_v8 = vpop.f32.mrb[6].mxu0  ;;  %v634_v11 = vpop.f32.mrb[6].mxu1 }
 0x230   :  { %v643_v21 = vrot.slane %v563_v8, 6  ;;  %v565_v22 = vpop.f32.mrb[7].mxu0  ;;  %v636_v23 = vpop.f32.mrb[7].mxu1  ;;  %v645_v26 = vrot.slane %v634_v11, 6  ;;  %v669_v8 = vrot.slane %v2759_v20, 6 }
 0x231   :  { %v644_v16 = vrot.slane %v565_v22, 6  ;;  %v646_v17 = vrot.slane %v636_v23, 6 }
 0x232   :  { %v651_v24 = vadd.f32 %v643_v21, %v2744_v56  ;;  %v653_v37 = vadd.f32 %v645_v26, %v2750_v18 }
 0x233   :  { %v652_v29 = vadd.f32 %v644_v16, %v2746_v57  ;;  %v654_v36 = vadd.f32 %v646_v17, %v2753_v12 }
 0x234   :  { %v655_v32 = vmul.f32 0.5, %v651_v24 }
 0x235   :  { %v659_v33 = vmul.f32 0.5, %v652_v29  ;;  %v663_v42 = vmul.f32 0.5, %v654_v36 }
 0x236   :  { %2337 = vtanh.f32 %v655_v32 }
 0x237   :  { %2339 = vtanh.f32 %v659_v33 }
 0x238   :  { %2341 = vtanh.f32 %v653_v37 }
 0x239   :  { %2343 = vtanh.f32 %v663_v42 }
 0x240   :  { %v2338_v47 = vpop.eup %2337 }
 0x241   :  { %v2340_v52 = vpop.eup %2339  ;;  %v657_v38 = vadd.f32 1.0, %v2338_v47 }
 0x242   :  { %v661_v59 = vadd.f32 1.0, %v2340_v52  ;;  %v2342_v4 = vpop.eup %2341 }
 0x243   :  { %v658_v63 = vmul.f32 0.5, %v657_v38  ;;  %v2344_v23 = vpop.eup %2343 }
 0x244   :  { %v662_v6 = vmul.f32 0.5, %v661_v59  ;;  %v665_v16 = vadd.f32 1.0, %v2344_v23 }
 0x245   :  { %v672_v11 = vmul.f32 %v2342_v4, %v658_v63 }
 0x246   :  { %v671_v21 = vmul.f32 %v669_v8, %v662_v6  ;;  %v666_v24 = vmul.f32 0.5, %v665_v16 }
 0x248   :  { %v2801_v22 = vadd.f32 %v672_v11, %v671_v21 }
 0x24a   :  { %2345 = vtanh.f32 %v2801_v22 }
 0x254   :  { %v2346_v26 = vpop.eup %2345 }
 0x255   :  { %v675_v29 = vmul.f32 %v2346_v26, %v666_v24 }
 0x257   :  { %677 = vst [vmem:[#allocation8] sm:$0xc] %v675_v29  ;;  %v679_v32 = vrot.slane %v675_v29, 2 }
 0x259   :  { %746 = vmatmul.mubr.f32.vlgmr.msra.gmra.mrb[8].mxu0 %v679_v32  ;;  %817 = vmatmul.mubr.f32.vlgmr.msra.gmra.mrb[8].mxu1 %v679_v32 }
 0x25a   :  { %2000 = vmatpush1.bf16.msra.mxu0 %v2594_v35  ;;  %2032 = vmatpush1.bf16.msra.mxu1 %v2597_v39 }
 0x25b   :  { %2002 = vmatprep.subr.bf16.mxu0 %v2599_v40  ;;  %2034 = vmatprep.subr.bf16.mxu1 %v2602_v44 }
 0x25c   :  { %929 = vmatprep.mubr.f32.mxu0 %v2508_v0  ;;  %1000 = vmatprep.mubr.f32.mxu1 %v2508_v0 }
 0x25e   :  { %2004 = vmatpush1.bf16.msra.mxu0 %v2607_v51  ;;  %2036 = vmatpush1.bf16.msra.mxu1 %v2611_v53 }
 0x25f   :  { %2006 = vmatprep.subr.bf16.mxu0 %v2613_v54  ;;  %2038 = vmatprep.subr.bf16.mxu1 %v2616_v58 }
 0x262   :  { %2008 = vmatpush1.bf16.msra.mxu0 %v2621_v1  ;;  %2040 = vmatpush1.bf16.msra.mxu1 %v2625_v2 }
 0x263   :  { %2010 = vmatprep.subr.bf16.mxu0 %v2627_v3  ;;  %2042 = vmatprep.subr.bf16.mxu1 %v2630_v7 }
 0x266   :  { %2012 = vmatpush1.bf16.msra.mxu0 %v2633_v13  ;;  %2044 = vmatpush1.bf16.msra.mxu1 %v2637_v14 }
 0x267   :  { %2014 = vmatprep.subr.bf16.mxu0 %v2639_v15  ;;  %2046 = vmatprep.subr.bf16.mxu1 %v2642_v19 }
 0x26a   :  { %2016 = vmatpush1.bf16.msra.mxu0 %v2645_v25  ;;  %2048 = vmatpush1.bf16.msra.mxu1 %v2649_v27 }
 0x26b   :  { %2018 = vmatprep.subr.bf16.mxu0 %v2651_v28  ;;  %2050 = vmatprep.subr.bf16.mxu1 %v2654_v34 }
 0x26e   :  { %2020 = vmatpush1.bf16.msra.mxu0 %v2660_v43  ;;  %2052 = vmatpush1.bf16.msra.mxu1 %v2665_v45 }
 0x26f   :  { %2022 = vmatprep.subr.bf16.mxu0 %v2667_v46  ;;  %2054 = vmatprep.subr.bf16.mxu1 %v2670_v50 }
 0x272   :  { %2024 = vmatpush1.bf16.msra.mxu0 %v2673_v60  ;;  %2056 = vmatpush1.bf16.msra.mxu1 %v2677_v61 }
 0x273   :  { %2026 = vmatprep.subr.bf16.mxu0 %v2679_v62  ;;  %2058 = vmatprep.subr.bf16.mxu1 %v2682_v5 }
 0x276   :  { %2028 = vmatpush1.bf16.msra.mxu0 %v2685_v9  ;;  %2060 = vmatpush1.bf16.msra.mxu1 %v2689_v10 }
 0x277   :  { %2062 = vmatprep.subr.bf16.mxu0 %v2590_v30  ;;  %2094 = vmatprep.subr.bf16.mxu1 %v2592_v31 }
 0x32c   :  { %v747_v20 = vpop.f32.mrb[8].mxu0  ;;  %v818_v33 = vpop.f32.mrb[8].mxu1 }
 0x32d   :  { %v827_v37 = vrot.slane %v747_v20, 4  ;;  %v749_v17 = vpop.f32.mrb[9].mxu0  ;;  %v820_v36 = vpop.f32.mrb[9].mxu1  ;;  %v829_v52 = vrot.slane %v818_v33, 4  ;;  %v853_v20 = vrot.slane %v2801_v22, 6 }
 0x32e   :  { %v828_v42 = vrot.slane %v749_v17, 4  ;;  %v830_v6 = vrot.slane %v820_v36, 4 }
 0x32f   :  { %v835_v47 = vadd.f32 %v827_v37, %v2744_v56  ;;  %v837_v4 = vadd.f32 %v829_v52, %v2750_v18 }
 0x330   :  { %v836_v38 = vadd.f32 %v828_v42, %v2746_v57  ;;  %v838_v8 = vadd.f32 %v830_v6, %v2753_v12 }
 0x331   :  { %v839_v59 = vmul.f32 0.5, %v835_v47 }
 0x332   :  { %v843_v63 = vmul.f32 0.5, %v836_v38  ;;  %v847_v11 = vmul.f32 0.5, %v838_v8 }
 0x333   :  { %2347 = vtanh.f32 %v839_v59 }
 0x334   :  { %2349 = vtanh.f32 %v843_v63 }
 0x335   :  { %2351 = vtanh.f32 %v837_v4 }
 0x336   :  { %2353 = vtanh.f32 %v847_v11 }
 0x33d   :  { %v2348_v21 = vpop.eup %2347 }
 0x33e   :  { %v2350_v23 = vpop.eup %2349  ;;  %v841_v16 = vadd.f32 1.0, %v2348_v21 }
 0x33f   :  { %v845_v24 = vadd.f32 1.0, %v2350_v23  ;;  %v2352_v29 = vpop.eup %2351 }
 0x340   :  { %v842_v26 = vmul.f32 0.5, %v841_v16  ;;  %v2354_v36 = vpop.eup %2353 }
 0x341   :  { %v846_v32 = vmul.f32 0.5, %v845_v24  ;;  %v849_v42 = vadd.f32 1.0, %v2354_v36 }
 0x342   :  { %v856_v33 = vmul.f32 %v2352_v29, %v842_v26 }
 0x343   :  { %v855_v37 = vmul.f32 %v853_v20, %v846_v32  ;;  %v850_v47 = vmul.f32 0.5, %v849_v42 }
 0x345   :  { %v2843_v17 = vadd.f32 %v856_v33, %v855_v37 }
 0x347   :  { %2355 = vtanh.f32 %v2843_v17 }
 0x351   :  { %v2356_v52 = vpop.eup %2355 }
 0x352   :  { %v859_v38 = vmul.f32 %v2356_v52, %v850_v47 }
 0x354   :  { %861 = vst [vmem:[#allocation8] sm:$0x30] %v859_v38  ;;  %v863_v59 = vrot.slane %v859_v38, 4 }
 0x356   :  { %930 = vmatmul.mubr.f32.vlgmr.msra.gmra.mrb[10].mxu0 %v863_v59  ;;  %1001 = vmatmul.mubr.f32.vlgmr.msra.gmra.mrb[10].mxu1 %v863_v59 }
 0x357   :  { %2064 = vmatpush1.bf16.msra.mxu0 %v2594_v35  ;;  %2096 = vmatpush1.bf16.msra.mxu1 %v2597_v39 }
 0x358   :  { %2066 = vmatprep.subr.bf16.mxu0 %v2599_v40  ;;  %2098 = vmatprep.subr.bf16.mxu1 %v2602_v44 }
 0x359   :  { %1113 = vmatprep.mubr.f32.mxu0 %v2508_v0  ;;  %1184 = vmatprep.mubr.f32.mxu1 %v2508_v0 }
 0x35b   :  { %2068 = vmatpush1.bf16.msra.mxu0 %v2607_v51  ;;  %2100 = vmatpush1.bf16.msra.mxu1 %v2611_v53 }
 0x35c   :  { %2070 = vmatprep.subr.bf16.mxu0 %v2613_v54  ;;  %2102 = vmatprep.subr.bf16.mxu1 %v2616_v58 }
 0x35f   :  { %2072 = vmatpush1.bf16.msra.mxu0 %v2621_v1  ;;  %2104 = vmatpush1.bf16.msra.mxu1 %v2625_v2 }
 0x360   :  { %2074 = vmatprep.subr.bf16.mxu0 %v2627_v3  ;;  %2106 = vmatprep.subr.bf16.mxu1 %v2630_v7 }
 0x363   :  { %2076 = vmatpush1.bf16.msra.mxu0 %v2633_v13  ;;  %2108 = vmatpush1.bf16.msra.mxu1 %v2637_v14 }
 0x364   :  { %2078 = vmatprep.subr.bf16.mxu0 %v2639_v15  ;;  %2110 = vmatprep.subr.bf16.mxu1 %v2642_v19 }
 0x367   :  { %2080 = vmatpush1.bf16.msra.mxu0 %v2645_v25  ;;  %2112 = vmatpush1.bf16.msra.mxu1 %v2649_v27 }
 0x368   :  { %2082 = vmatprep.subr.bf16.mxu0 %v2651_v28  ;;  %2114 = vmatprep.subr.bf16.mxu1 %v2654_v34 }
 0x36b   :  { %2084 = vmatpush1.bf16.msra.mxu0 %v2660_v43  ;;  %2116 = vmatpush1.bf16.msra.mxu1 %v2665_v45 }
 0x36c   :  { %2086 = vmatprep.subr.bf16.mxu0 %v2667_v46  ;;  %2118 = vmatprep.subr.bf16.mxu1 %v2670_v50 }
 0x36f   :  { %2088 = vmatpush1.bf16.msra.mxu0 %v2673_v60  ;;  %2120 = vmatpush1.bf16.msra.mxu1 %v2677_v61 }
 0x370   :  { %2090 = vmatprep.subr.bf16.mxu0 %v2679_v62  ;;  %2122 = vmatprep.subr.bf16.mxu1 %v2682_v5 }
 0x373   :  { %2092 = vmatpush1.bf16.msra.mxu0 %v2685_v9  ;;  %2124 = vmatpush1.bf16.msra.mxu1 %v2689_v10 }
 0x374   :  { %2126 = vmatprep.subr.bf16.mxu0 %v2590_v30  ;;  %2158 = vmatprep.subr.bf16.mxu1 %v2592_v31 }
 0x429   :  { %v931_v22 = vpop.f32.mrb[10].mxu0  ;;  %v1002_v63 = vpop.f32.mrb[10].mxu1 }
 0x42a   :  { %v1011_v4 = vrot.slane %v931_v22, 2  ;;  %v933_v6 = vpop.f32.mrb[11].mxu0  ;;  %v1004_v8 = vpop.f32.mrb[11].mxu1  ;;  %v1013_v23 = vrot.slane %v1002_v63, 2 }
 0x42b   :  { %v1012_v11 = vrot.slane %v933_v6, 2  ;;  %v1014_v32 = vrot.slane %v1004_v8, 2 }
 0x42c   :  { %v1019_v21 = vadd.f32 %v1011_v4, %v2744_v56  ;;  %v1021_v29 = vadd.f32 %v1013_v23, %v2750_v18 }
 0x42d   :  { %v1020_v16 = vadd.f32 %v1012_v11, %v2746_v57  ;;  %v1022_v20 = vadd.f32 %v1014_v32, %v2753_v12  ;;  %v1037_v57 = vrot.slane %v2843_v17, 6 }
 0x42e   :  { %v1023_v24 = vmul.f32 0.5, %v1019_v21 }
 0x42f   :  { %v1027_v26 = vmul.f32 0.5, %v1020_v16  ;;  %v1031_v33 = vmul.f32 0.5, %v1022_v20 }
 0x430   :  { %2357 = vtanh.f32 %v1023_v24 }
 0x431   :  { %2359 = vtanh.f32 %v1027_v26 }
 0x432   :  { %2361 = vtanh.f32 %v1021_v29 }
 0x433   :  { %2363 = vtanh.f32 %v1031_v33 }
 0x43a   :  { %v2358_v37 = vpop.eup %2357 }
 0x43b   :  { %v2360_v36 = vpop.eup %2359  ;;  %v1025_v42 = vadd.f32 1.0, %v2358_v37 }
 0x43c   :  { %v1029_v47 = vadd.f32 1.0, %v2360_v36  ;;  %v2362_v52 = vpop.eup %2361 }
 0x43d   :  { %v1026_v56 = vmul.f32 0.5, %v1025_v42  ;;  %v2364_v18 = vpop.eup %2363 }
 0x43e   :  { %v1030_v38 = vmul.f32 0.5, %v1029_v47  ;;  %v1033_v4 = vadd.f32 1.0, %v2364_v18 }
 0x43f   :  { %v1040_v59 = vmul.f32 %v2362_v52, %v1026_v56 }
 0x440   :  { %v1039_v22 = vmul.f32 %v1037_v57, %v1030_v38  ;;  %v1034_v12 = vmul.f32 0.5, %v1033_v4 }
 0x442   :  { %v2885_v63 = vadd.f32 %v1040_v59, %v1039_v22 }
 0x444   :  { %2365 = vtanh.f32 %v2885_v63  ;;  %v1209_v59 = vrot.slane %v2885_v63, 6 }
 0x44e   :  { %v2366_v6 = vpop.eup %2365 }
 0x44f   :  { %v1043_v8 = vmul.f32 %v2366_v6, %v1034_v12 }
 0x451   :  { %1045 = vst [vmem:[#allocation8] sm:$0xc0] %v1043_v8  ;;  %v1047_v11 = vrot.slane %v1043_v8, 6 }
 0x453   :  { %1114 = vmatmul.mubr.f32.vlgmr.msra.gmra.mrb[12].mxu0 %v1047_v11  ;;  %1185 = vmatmul.mubr.f32.vlgmr.msra.gmra.mrb[12].mxu1 %v1047_v11 }
 0x454   :  { %2128 = vmatpush1.bf16.msra.mxu0 %v2594_v35  ;;  %2160 = vmatpush1.bf16.msra.mxu1 %v2597_v39 }
 0x455   :  { %2130 = vmatprep.subr.bf16.mxu0 %v2599_v40  ;;  %2162 = vmatprep.subr.bf16.mxu1 %v2602_v44 }
 0x456   :  { %1282 = vmatprep.mubr.f32.mxu0 %v2508_v0  ;;  %1353 = vmatprep.mubr.f32.mxu1 %v2508_v0 }
 0x458   :  { %2132 = vmatpush1.bf16.msra.mxu0 %v2607_v51  ;;  %2164 = vmatpush1.bf16.msra.mxu1 %v2611_v53 }
 0x459   :  { %2134 = vmatprep.subr.bf16.mxu0 %v2613_v54  ;;  %2166 = vmatprep.subr.bf16.mxu1 %v2616_v58 }
 0x45c   :  { %2136 = vmatpush1.bf16.msra.mxu0 %v2621_v1  ;;  %2168 = vmatpush1.bf16.msra.mxu1 %v2625_v2 }
 0x45d   :  { %2138 = vmatprep.subr.bf16.mxu0 %v2627_v3  ;;  %2170 = vmatprep.subr.bf16.mxu1 %v2630_v7 }
 0x460   :  { %2140 = vmatpush1.bf16.msra.mxu0 %v2633_v13  ;;  %2172 = vmatpush1.bf16.msra.mxu1 %v2637_v14 }
 0x461   :  { %2142 = vmatprep.subr.bf16.mxu0 %v2639_v15  ;;  %2174 = vmatprep.subr.bf16.mxu1 %v2642_v19 }
 0x464   :  { %2144 = vmatpush1.bf16.msra.mxu0 %v2645_v25  ;;  %2176 = vmatpush1.bf16.msra.mxu1 %v2649_v27 }
 0x465   :  { %2146 = vmatprep.subr.bf16.mxu0 %v2651_v28  ;;  %2178 = vmatprep.subr.bf16.mxu1 %v2654_v34 }
 0x468   :  { %2148 = vmatpush1.bf16.msra.mxu0 %v2660_v43  ;;  %2180 = vmatpush1.bf16.msra.mxu1 %v2665_v45 }
 0x469   :  { %2150 = vmatprep.subr.bf16.mxu0 %v2667_v46  ;;  %2182 = vmatprep.subr.bf16.mxu1 %v2670_v50 }
 0x46c   :  { %2152 = vmatpush1.bf16.msra.mxu0 %v2673_v60  ;;  %2184 = vmatpush1.bf16.msra.mxu1 %v2677_v61 }
 0x46d   :  { %2154 = vmatprep.subr.bf16.mxu0 %v2679_v62  ;;  %2186 = vmatprep.subr.bf16.mxu1 %v2682_v5 }
 0x470   :  { %2156 = vmatpush1.bf16.msra.mxu0 %v2685_v9  ;;  %2188 = vmatpush1.bf16.msra.mxu1 %v2689_v10 }
 0x471   :  { %2190 = vmatprep.subr.bf16.mxu0 %v2590_v30  ;;  %2222 = vmatprep.subr.bf16.mxu1 %v2592_v31 }
 0x526   :  { %v1115_v17 = vpop.f32.mrb[12].mxu0  ;;  %v1186_v21 = vpop.f32.mrb[12].mxu1 }
 0x527   :  { %v1191_v23 = vadd.f32 %v1115_v17, %v2736_v41  ;;  %v1117_v16 = vpop.f32.mrb[13].mxu0  ;;  %v1188_v24 = vpop.f32.mrb[13].mxu1  ;;  %v1193_v20 = vadd.f32 %v1186_v21, %v2740_v49 }
 0x528   :  { %v1192_v26 = vadd.f32 %v1117_v16, %v2738_v48  ;;  %v1194_v33 = vadd.f32 %v1188_v24, %v2742_v55 }
 0x529   :  { %v1195_v29 = vmul.f32 0.5, %v1191_v23 }
 0x52a   :  { %v1199_v32 = vmul.f32 0.5, %v1192_v26  ;;  %v1203_v37 = vmul.f32 0.5, %v1194_v33 }
 0x52b   :  { %2367 = vtanh.f32 %v1195_v29 }
 0x52c   :  { %2369 = vtanh.f32 %v1199_v32 }
 0x52d   :  { %2371 = vtanh.f32 %v1193_v20 }
 0x52e   :  { %2373 = vtanh.f32 %v1203_v37 }
 0x535   :  { %v2368_v36 = vpop.eup %2367 }
 0x536   :  { %v2370_v42 = vpop.eup %2369  ;;  %v1197_v47 = vadd.f32 1.0, %v2368_v36 }
 0x537   :  { %v1201_v56 = vadd.f32 1.0, %v2370_v42  ;;  %v2372_v38 = vpop.eup %2371 }
 0x538   :  { %v1198_v52 = vmul.f32 0.5, %v1197_v47  ;;  %v2374_v12 = vpop.eup %2373 }
 0x539   :  { %v1202_v57 = vmul.f32 0.5, %v1201_v56  ;;  %v1205_v6 = vadd.f32 1.0, %v2374_v12 }
 0x53a   :  { %v1212_v22 = vmul.f32 %v2372_v38, %v1198_v52 }
 0x53b   :  { %v1211_v18 = vmul.f32 %v1209_v59, %v1202_v57  ;;  %v1206_v8 = vmul.f32 0.5, %v1205_v6 }
 0x53d   :  { %v2927_v4 = vadd.f32 %v1212_v22, %v1211_v18 }
 0x53f   :  { %2375 = vtanh.f32 %v2927_v4  ;;  %v1390_v18 = vrot.slane %v2927_v4, 6 }
 0x549   :  { %v2376_v11 = vpop.eup %2375 }
 0x54a   :  { %v1215_v17 = vmul.f32 %v2376_v11, %v1206_v8 }
 0x54c   :  { %1217 = vst [vmem:[#allocation8 + $0x8] sm:$0x3] %v1215_v17  ;;  %1283 = vmatmul.mubr.f32.vlgmr.msra.gmra.mrb[14].mxu0 %v1215_v17  ;;  %1354 = vmatmul.mubr.f32.vlgmr.msra.gmra.mrb[14].mxu1 %v1215_v17 }
 0x54d   :  { %2192 = vmatpush1.bf16.msra.mxu0 %v2594_v35  ;;  %2224 = vmatpush1.bf16.msra.mxu1 %v2597_v39 }
 0x54e   :  { %2194 = vmatprep.subr.bf16.mxu0 %v2599_v40  ;;  %2226 = vmatprep.subr.bf16.mxu1 %v2602_v44 }
 0x54f   :  { %1466 = vmatprep.mubr.f32.mxu0 %v2508_v0  ;;  %1537 = vmatprep.mubr.f32.mxu1 %v2508_v0 }
 0x551   :  { %2196 = vmatpush1.bf16.msra.mxu0 %v2607_v51  ;;  %2228 = vmatpush1.bf16.msra.mxu1 %v2611_v53 }
 0x552   :  { %2198 = vmatprep.subr.bf16.mxu0 %v2613_v54  ;;  %2230 = vmatprep.subr.bf16.mxu1 %v2616_v58 }
 0x555   :  { %2200 = vmatpush1.bf16.msra.mxu0 %v2621_v1  ;;  %2232 = vmatpush1.bf16.msra.mxu1 %v2625_v2 }
 0x556   :  { %2202 = vmatprep.subr.bf16.mxu0 %v2627_v3  ;;  %2234 = vmatprep.subr.bf16.mxu1 %v2630_v7 }
 0x559   :  { %2204 = vmatpush1.bf16.msra.mxu0 %v2633_v13  ;;  %2236 = vmatpush1.bf16.msra.mxu1 %v2637_v14 }
 0x55a   :  { %2206 = vmatprep.subr.bf16.mxu0 %v2639_v15  ;;  %2238 = vmatprep.subr.bf16.mxu1 %v2642_v19 }
 0x55d   :  { %2208 = vmatpush1.bf16.msra.mxu0 %v2645_v25  ;;  %2240 = vmatpush1.bf16.msra.mxu1 %v2649_v27 }
 0x55e   :  { %2210 = vmatprep.subr.bf16.mxu0 %v2651_v28  ;;  %2242 = vmatprep.subr.bf16.mxu1 %v2654_v34 }
 0x561   :  { %2212 = vmatpush1.bf16.msra.mxu0 %v2660_v43  ;;  %2244 = vmatpush1.bf16.msra.mxu1 %v2665_v45 }
 0x562   :  { %2214 = vmatprep.subr.bf16.mxu0 %v2667_v46  ;;  %2246 = vmatprep.subr.bf16.mxu1 %v2670_v50 }
 0x565   :  { %2216 = vmatpush1.bf16.msra.mxu0 %v2673_v60  ;;  %2248 = vmatpush1.bf16.msra.mxu1 %v2677_v61 }
 0x566   :  { %2218 = vmatprep.subr.bf16.mxu0 %v2679_v62  ;;  %2250 = vmatprep.subr.bf16.mxu1 %v2682_v5 }
 0x569   :  { %2220 = vmatpush1.bf16.msra.mxu0 %v2685_v9  ;;  %2252 = vmatpush1.bf16.msra.mxu1 %v2689_v10 }
 0x56a   :  { %2254 = vmatprep.subr.bf16.mxu0 %v2590_v30  ;;  %2286 = vmatprep.subr.bf16.mxu1 %v2592_v31 }
 0x61f   :  { %v1284_v63 = vpop.f32.mrb[14].mxu0  ;;  %v1355_v21 = vpop.f32.mrb[14].mxu1 }
 0x620   :  { %v1364_v23 = vrot.slane %v1284_v63, 6  ;;  %v1286_v16 = vpop.f32.mrb[15].mxu0  ;;  %v1357_v24 = vpop.f32.mrb[15].mxu1  ;;  %v1366_v32 = vrot.slane %v1355_v21, 6 }
 0x621   :  { %v1365_v26 = vrot.slane %v1286_v16, 6  ;;  %v1367_v42 = vrot.slane %v1357_v24, 6 }
 0x622   :  { %v1372_v29 = vadd.f32 %v1364_v23, %v2736_v41  ;;  %v1374_v36 = vadd.f32 %v1366_v32, %v2740_v49 }
 0x623   :  { %v1373_v20 = vadd.f32 %v1365_v26, %v2738_v48  ;;  %v1375_v30 = vadd.f32 %v1367_v42, %v2742_v55 }
 0x624   :  { %v1376_v33 = vmul.f32 0.5, %v1372_v29 }
 0x625   :  { %v1380_v37 = vmul.f32 0.5, %v1373_v20  ;;  %v1384_v31 = vmul.f32 0.5, %v1375_v30 }
 0x626   :  { %2377 = vtanh.f32 %v1376_v33 }
 0x627   :  { %2379 = vtanh.f32 %v1380_v37 }
 0x628   :  { %2381 = vtanh.f32 %v1374_v36 }
 0x629   :  { %2383 = vtanh.f32 %v1384_v31 }
 0x630   :  { %v2378_v47 = vpop.eup %2377 }
 0x631   :  { %v2380_v56 = vpop.eup %2379  ;;  %v1378_v52 = vadd.f32 1.0, %v2378_v47 }
 0x632   :  { %v1382_v38 = vadd.f32 1.0, %v2380_v56  ;;  %v2382_v59 = vpop.eup %2381 }
 0x633   :  { %v1379_v57 = vmul.f32 0.5, %v1378_v52  ;;  %v2384_v11 = vpop.eup %2383 }
 0x634   :  { %v1383_v22 = vmul.f32 0.5, %v1382_v38  ;;  %v1386_v17 = vadd.f32 1.0, %v2384_v11 }
 0x635   :  { %v1393_v12 = vmul.f32 %v2382_v59, %v1379_v57 }
 0x636   :  { %v1392_v6 = vmul.f32 %v1390_v18, %v1383_v22  ;;  %v1387_v63 = vmul.f32 0.5, %v1386_v17 }
 0x638   :  { %v2969_v8 = vadd.f32 %v1393_v12, %v1392_v6 }
 0x63a   :  { %2385 = vtanh.f32 %v2969_v8 }
 0x644   :  { %v2386_v21 = vpop.eup %2385 }
 0x645   :  { %v1396_v23 = vmul.f32 %v2386_v21, %v1387_v63 }
 0x647   :  { %1398 = vst [vmem:[#allocation8 + $0x8] sm:$0xc] %v1396_v23  ;;  %v1400_v16 = vrot.slane %v1396_v23, 2 }
 0x649   :  { %1467 = vmatmul.mubr.f32.vlgmr.msra.gmra.mrb[16].mxu0 %v1400_v16  ;;  %1538 = vmatmul.mubr.f32.vlgmr.msra.gmra.mrb[16].mxu1 %v1400_v16 }
 0x64a   :  { %2256 = vmatpush1.bf16.msra.mxu0 %v2594_v35  ;;  %2288 = vmatpush1.bf16.msra.mxu1 %v2597_v39 }
 0x64b   :  { %2258 = vmatprep.subr.bf16.mxu0 %v2599_v40  ;;  %2290 = vmatprep.subr.bf16.mxu1 %v2602_v44 }
 0x64c   :  { %1650 = vmatprep.mubr.f32.mxu0 %v2508_v0  ;;  %1721 = vmatprep.mubr.f32.mxu1 %v2508_v0 }
 0x64e   :  { %2260 = vmatpush1.bf16.msra.mxu0 %v2607_v51  ;;  %2292 = vmatpush1.bf16.msra.mxu1 %v2611_v53 }
 0x64f   :  { %2262 = vmatprep.subr.bf16.mxu0 %v2613_v54  ;;  %2294 = vmatprep.subr.bf16.mxu1 %v2616_v58 }
 0x652   :  { %2264 = vmatpush1.bf16.msra.mxu0 %v2621_v1  ;;  %2296 = vmatpush1.bf16.msra.mxu1 %v2625_v2 }
 0x653   :  { %2266 = vmatprep.subr.bf16.mxu0 %v2627_v3  ;;  %2298 = vmatprep.subr.bf16.mxu1 %v2630_v7 }
 0x656   :  { %2268 = vmatpush1.bf16.msra.mxu0 %v2633_v13  ;;  %2300 = vmatpush1.bf16.msra.mxu1 %v2637_v14 }
 0x657   :  { %2270 = vmatprep.subr.bf16.mxu0 %v2639_v15  ;;  %2302 = vmatprep.subr.bf16.mxu1 %v2642_v19 }
 0x65a   :  { %2272 = vmatpush1.bf16.msra.mxu0 %v2645_v25  ;;  %2304 = vmatpush1.bf16.msra.mxu1 %v2649_v27 }
 0x65b   :  { %2274 = vmatprep.subr.bf16.mxu0 %v2651_v28  ;;  %2306 = vmatprep.subr.bf16.mxu1 %v2654_v34 }
 0x65e   :  { %2276 = vmatpush1.bf16.msra.mxu0 %v2660_v43  ;;  %2308 = vmatpush1.bf16.msra.mxu1 %v2665_v45  ;;  %v1574_v45 = vrot.slane %v2969_v8, 6 }
 0x65f   :  { %2278 = vmatprep.subr.bf16.mxu0 %v2667_v46  ;;  %2310 = vmatprep.subr.bf16.mxu1 %v2670_v50 }
 0x662   :  { %2280 = vmatpush1.bf16.msra.mxu0 %v2673_v60  ;;  %2312 = vmatpush1.bf16.msra.mxu1 %v2677_v61 }
 0x663   :  { %2282 = vmatprep.subr.bf16.mxu0 %v2679_v62  ;;  %2314 = vmatprep.subr.bf16.mxu1 %v2682_v5 }
 0x666   :  { %2284 = vmatpush1.bf16.msra.mxu0 %v2685_v9  ;;  %2316 = vmatpush1.bf16.msra.mxu1 %v2689_v10 }
 0x71c   :  { %v1468_v0 = vpop.f32.mrb[16].mxu0  ;;  %v1539_v35 = vpop.f32.mrb[16].mxu1 }
 0x71d   :  { %v1548_v39 = vrot.slane %v1468_v0, 4  ;;  %v1470_v40 = vpop.f32.mrb[17].mxu0  ;;  %v1541_v44 = vpop.f32.mrb[17].mxu1  ;;  %v1550_v54 = vrot.slane %v1539_v35, 4 }
 0x71e   :  { %v1549_v51 = vrot.slane %v1470_v40, 4  ;;  %v1551_v7 = vrot.slane %v1541_v44, 4 }
 0x71f   :  { %v1556_v53 = vadd.f32 %v1548_v39, %v2736_v41  ;;  %v1558_v3 = vadd.f32 %v1550_v54, %v2740_v49 }
 0x720   :  { %v1557_v58 = vadd.f32 %v1549_v51, %v2738_v48  ;;  %v1559_v13 = vadd.f32 %v1551_v7, %v2742_v55 }
 0x721   :  { %v1560_v1 = vmul.f32 0.5, %v1556_v53 }
 0x722   :  { %v1564_v2 = vmul.f32 0.5, %v1557_v58  ;;  %v1568_v14 = vmul.f32 0.5, %v1559_v13 }
 0x723   :  { %2387 = vtanh.f32 %v1560_v1 }
 0x724   :  { %2389 = vtanh.f32 %v1564_v2 }
 0x725   :  { %2391 = vtanh.f32 %v1558_v3 }
 0x726   :  { %2393 = vtanh.f32 %v1568_v14 }
 0x72d   :  { %v2388_v15 = vpop.eup %2387 }
 0x72e   :  { %v2390_v19 = vpop.eup %2389  ;;  %v1562_v25 = vadd.f32 1.0, %v2388_v15 }
 0x72f   :  { %v1566_v27 = vadd.f32 1.0, %v2390_v19  ;;  %v2392_v34 = vpop.eup %2391 }
 0x730   :  { %v1563_v28 = vmul.f32 0.5, %v1562_v25  ;;  %v2394_v61 = vpop.eup %2393 }
 0x731   :  { %v1567_v43 = vmul.f32 0.5, %v1566_v27  ;;  %v1570_v62 = vadd.f32 1.0, %v2394_v61 }
 0x732   :  { %v1577_v46 = vmul.f32 %v2392_v34, %v1563_v28 }
 0x733   :  { %v1576_v50 = vmul.f32 %v1574_v45, %v1567_v43  ;;  %v1571_v5 = vmul.f32 0.5, %v1570_v62 }
 0x735   :  { %v1578_v60 = vadd.f32 %v1577_v46, %v1576_v50 }
 0x737   :  { %2395 = vtanh.f32 %v1578_v60 }
 0x741   :  { %v2396_v9 = vpop.eup %2395 }
 0x742   :  { %v1580_v10 = vmul.f32 %v2396_v9, %v1571_v5 }
 0x744   :  { %1582 = vst [vmem:[#allocation8 + $0x8] sm:$0x30] %v1580_v10  ;;  %v1584_v4 = vrot.slane %v1580_v10, 4 }
 0x746   :  { %1651 = vmatmul.mubr.f32.vlgmr.msra.gmra.mrb[18].mxu0 %v1584_v4  ;;  %1722 = vmatmul.mubr.f32.vlgmr.msra.gmra.mrb[18].mxu1 %v1584_v4 }
 0x819   :  { %v1652_v24 = vpop.f32.mrb[18].mxu0  ;;  %v1723_v26 = vpop.f32.mrb[18].mxu1 }
 0x81a   :  { %v1732_v29 = vrot.slane %v1652_v24, 2  ;;  %v1654_v32 = vpop.f32.mrb[19].mxu0  ;;  %v1725_v20 = vpop.f32.mrb[19].mxu1  ;;  %v1734_v36 = vrot.slane %v1723_v26, 2 }
 0x81b   :  { %v1733_v33 = vrot.slane %v1654_v32, 2  ;;  %v1735_v56 = vrot.slane %v1725_v20, 2 }
 0x81c   :  { %v1740_v37 = vadd.f32 %v1732_v29, %v2736_v41  ;;  %v1742_v47 = vadd.f32 %v1734_v36, %v2740_v49 }
 0x81d   :  { %v1741_v42 = vadd.f32 %v1733_v33, %v2738_v48  ;;  %v1743_v52 = vadd.f32 %v1735_v56, %v2742_v55  ;;  %v1758_v48 = vrot.slane %v1578_v60, 6 }
 0x81e   :  { %v1744_v30 = vmul.f32 0.5, %v1740_v37 }
 0x81f   :  { %v1748_v31 = vmul.f32 0.5, %v1741_v42  ;;  %v1752_v38 = vmul.f32 0.5, %v1743_v52 }
 0x820   :  { %2397 = vtanh.f32 %v1744_v30 }
 0x821   :  { %2399 = vtanh.f32 %v1748_v31 }
 0x822   :  { %2401 = vtanh.f32 %v1742_v47 }
 0x823   :  { %2403 = vtanh.f32 %v1752_v38 }
 0x82a   :  { %v2398_v57 = vpop.eup %2397 }
 0x82b   :  { %v2400_v59 = vpop.eup %2399  ;;  %v1746_v22 = vadd.f32 1.0, %v2398_v57 }
 0x82c   :  { %v1750_v18 = vadd.f32 1.0, %v2400_v59  ;;  %v2402_v12 = vpop.eup %2401 }
 0x82d   :  { %v1747_v41 = vmul.f32 0.5, %v1746_v22  ;;  %v2404_v49 = vpop.eup %2403 }
 0x82e   :  { %v1751_v6 = vmul.f32 0.5, %v1750_v18  ;;  %v1754_v63 = vadd.f32 1.0, %v2404_v49 }
 0x82f   :  { %v1761_v8 = vmul.f32 %v2402_v12, %v1747_v41 }
 0x830   :  { %v1760_v11 = vmul.f32 %v1758_v48, %v1751_v6  ;;  %v1755_v21 = vmul.f32 0.5, %v1754_v63 }
 0x832   :  { %v1762_v17 = vadd.f32 %v1761_v8, %v1760_v11 }
 0x834   :  { %2405 = vtanh.f32 %v1762_v17 }
 0x83e   :  { %v2406_v55 = vpop.eup %2405 }
 0x83f   :  { %v1764_v23 = vmul.f32 %v2406_v55, %v1755_v21 }
 0x841   :  { %1766 = vst [vmem:[#allocation8 + $0x8] sm:$0xc0] %v1764_v23 }
 0x842   :  { %2484 = shalt.err (!%p2481_p0)
}
 0x843   :  { %s2485_s19 = scalar_lea.hbm %s3033_s6, 256 }
 0x844   :  { %p2486_p1 = scmp.ne.s32.totalorder %s3033_s6, %s2485_s19  ;;  %p2489_p2 = scmp.lt.u32.totalorder %s2485_s19, %s3033_s6 }
 0x846   :  { %p2491_p3 = pnand %p2489_p2, %p2486_p1 }
 0x848   :  { %2494 = shalt.err (!%p2491_p3)
}
 0x849   :  { %s2510_s23 = smov 2  }
 0x84a   :  { %1778 = dma.vmem_to_hbm [thread:$0]  %s1773_s15, 256, %s3033_s6, [#allocation4], %s2503_s8, %s2503_s8, %s2510_s23  }
 0x84b   :  { %2499 = dma.done.wait [#allocation4], 256  }
 0x84c   :  { %2500 = vsyncadd [#allocation4], 4294967040 }
 0x84d   :  { %1782 = vsyncpa [#allocation3], 1 }
 0x84e   :  { %1783 = vsyncpa [#allocation6], 1 }
 0x84f   :  { %1784 = vsyncpa [#allocation4], 1 }

</bundles_post_ra>
